<compile_context>
chip_gen: v7x
topology: tpu7x:2x2x1
jax: 0.10.0
libtpu: 0.0.40
codegen_flags: <defaults>
</compile_context>

<pallas_src>
import functools

import jax
import jax.numpy as jnp
import numpy as np
from jax.experimental import pallas as pl
from jax.experimental.pallas import tpu as pltpu

NEG_PAD = -2.0 ** 32 + 1.0     # padding constant used by the PyTorch reference
LN_EPS = 1e-8


def _layer_norm(x, gamma, beta, col_mask=None, n_real=None):
    """Matches the custom LayerNorm (torch.var is unbiased, divisor N-1).

    col_mask / n_real handle the per-head lane padding: statistics are taken
    over the `n_real` real columns only (padded columns of x are exact zeros).
    """
    n = n_real if n_real is not None else x.shape[-1]
    mean = jnp.sum(x, axis=-1, keepdims=True) * (1.0 / n)
    cen = x - mean
    if col_mask is not None:
        cen = cen * col_mask
    var = jnp.sum(cen * cen, axis=-1, keepdims=True) * (1.0 / (n - 1))
    return gamma * (cen * jax.lax.rsqrt(var + LN_EPS)) + beta


def _sab_kernel(num_heads, h_true, compute_dtype, x_ref, w_ref, b_ref, ln_ref, o_ref):
    Bb, T, Hp = x_ref.shape
    nh = num_heads
    dhp = Hp // nh            # lane-padded per-head width
    dh = h_true // nh         # true per-head width
    cdt = compute_dtype

    x3 = x_ref[...]                               # [Bb, T, Hp] f32 (pads are 0)
    x2 = x3.reshape(Bb * T, Hp)                   # sublane-dense 2-D slab

    # column validity mask for LayerNorm statistics (per-head padded layout)
    if dhp == dh:
        col_mask = None
    else:
        lane = jax.lax.broadcasted_iota(jnp.int32, (1, Hp), 1)
        col_mask = ((lane % dhp) < dh).astype(jnp.float32)

    g1, be1 = ln_ref[0:1, :], ln_ref[1:2, :]
    g2, be2 = ln_ref[2:3, :], ln_ref[3:4, :]

    # ---- multihead_attention_norm (queries); keys/values use raw x ---------
    q2 = _layer_norm(x2, g1, be1, col_mask, h_true)          # f32 [Bb*T, Hp]

    # ---- fused projections: Q (scale pre-folded) and K|V -------------------
    qc, xc = q2.astype(cdt), x2.astype(cdt)
    Q = jnp.dot(qc, w_ref[:, :Hp],
                preferred_element_type=jnp.float32) + b_ref[:, :Hp]
    KV = jnp.dot(xc, w_ref[:, Hp:3 * Hp],
                 preferred_element_type=jnp.float32) + b_ref[:, Hp:3 * Hp]
    K, V = KV[:, :Hp], KV[:, Hp:]

    # ---- padding / causal masks (computed once for all heads, as f32 0/1) --
    key_sums = jnp.sum(x3, axis=-1, keepdims=True)           # [Bb, T, 1]
    key_row = jnp.swapaxes(key_sums, -1, -2) != 0.0           # [Bb, 1, T]
    rows = jax.lax.broadcasted_iota(jnp.int32, (T, T), 0)
    cols = jax.lax.broadcasted_iota(jnp.int32, (T, T), 1)
    keep_f = (key_row & (rows >= cols)[None]).astype(jnp.float32)   # [Bb, T, T]
    # NOTE: inherited reference quirk — the query mask is taken from the normed
    # queries (zero input rows map to beta, so they are rarely masked).
    q_keep_f = (jnp.sum(q2, axis=-1, keepdims=True)
                .reshape(Bb, 1, T, 1) != 0.0).astype(jnp.float32)

    # ---- head split: single relayout instead of nh lane-slices + stack -----
    def split_heads(m2):                      # [Bb*T, Hp] -> [Bb*nh, T, dhp]
        if nh == 1:
            return m2.reshape(Bb, T, dhp)
        m4 = m2.reshape(Bb, T, nh, dhp)
        return pltpu.einshape("btnd->bntd", m4).reshape(Bb * nh, T, dhp)

    Qh = split_heads(Q).astype(cdt)
    Kh = split_heads(K).astype(cdt)
    Vh = split_heads(V).astype(cdt)

    # ---- head-batched attention (padded lanes of Q/K/V are exact zeros) ----
    s = jnp.einsum("bqd,bkd->bqk", Qh, Kh,
                   preferred_element_type=jnp.float32)        # [Bb*nh, T, T]
    s4 = s.reshape(Bb, nh, T, T)
    # rowmax over the RAW scores is a valid softmax stabilizer; masked entries
    # are removed by the keep multiply (no NEG_PAD select / masked max needed).
    rowmax = jnp.max(s4, axis=-1, keepdims=True)
    e = jnp.exp(s4 - rowmax) * keep_f[:, None]                # key + causal mask
    denom = jnp.sum(e, axis=-1, keepdims=True)
    p4 = e * (pl.reciprocal(denom + 1e-30, approx=True) * q_keep_f)

    ctx = jnp.einsum("bqk,bkd->bqd",
                     p4.reshape(Bb * nh, T, T).astype(cdt), Vh,
                     preferred_element_type=jnp.float32)      # [Bb*nh, T, dhp]
    if nh == 1:
        attn = ctx.reshape(Bb * T, Hp)
    else:
        attn = pltpu.einshape("bntd->btnd",
                              ctx.reshape(Bb, nh, T, dhp)).reshape(Bb * T, Hp)

    y2 = attn + q2                                            # residual (+ normed q)

    # ---- feedforward_norm + Feedforward (1x1 convs == matmuls) -------------
    z = _layer_norm(y2, g2, be2, col_mask, h_true)
    h1 = jnp.dot(z.astype(cdt), w_ref[:, 3 * Hp:4 * Hp],
                 preferred_element_type=jnp.float32) + b_ref[:, 3 * Hp:4 * Hp]
    h1 = jnp.maximum(h1, 0.0)
    f = jnp.dot(h1.astype(cdt), w_ref[:, 4 * Hp:],
                preferred_element_type=jnp.float32) + b_ref[:, 4 * Hp:]
    o_ref[...] = (f + z).reshape(Bb, T, Hp).astype(o_ref.dtype)  # residual (+ normed y)


# ----------------------------- wrapper helpers -------------------------------

def _vmem_capacity_bytes():
    try:
        return int(pltpu.get_tpu_info().vmem_capacity_bytes)
    except Exception:
        return 64 * 2 ** 20          # conservative fallback (v7x per-TC size)


def _tensorcores_per_chip():
    # Only v7x exposes 2 TensorCores to a megacore-sharded 'parallel' grid axis;
    # v5e/v6e run the grid as a sequential loop, so don't split blocks for them.
    try:
        kind = jax.devices()[0].device_kind.lower()
    except Exception:
        return 1
    return 2 if "v7" in kind else 1


_ACT_F32_COPIES = 16     # resident [T, Hp] f32 slabs per batch row (in/out dbl-buffer + temps)
_SCORE_F32_COPIES = 6    # resident [T, T] f32 slabs per (batch row, head)


def _per_row_bytes(T, Hp, nh):
    return _ACT_F32_COPIES * T * Hp * 4 + _SCORE_F32_COPIES * nh * T * T * 4


def _choose_block_b(B, T, Hp, nh, w_bytes, vmem_cap, n_tc):
    # Largest block that fits ~75% of this generation's VMEM (weights counted
    # once: they are single-buffered, plus 1.5x slack).
    budget = int(0.75 * vmem_cap) - int(1.5 * w_bytes)
    bb = max(1, budget // _per_row_bytes(T, Hp, nh))
    bb = min(bb, B)
    if n_tc >= 2 and B > 1:
        bb = min(bb, -(-B // 2))     # >= 2 grid steps so both v7x TCs get work
    return max(1, int(bb))


def _vmem_limit_bytes(bb, T, Hp, nh, w_bytes, vmem_cap):
    est = bb * _per_row_bytes(T, Hp, nh) + int(1.5 * w_bytes) + (8 << 20)
    return int(min(max(est, 32 << 20), int(0.75 * vmem_cap)))


def _pad_heads(v, nh, dh, dhp):
    """Scatter the last dim (nh*dh) into a per-head lane-padded layout (nh*dhp)."""
    if dhp == dh:
        return v
    lead = v.shape[:-1]
    vr = v.reshape(lead + (nh, dh))
    pad = [(0, 0)] * (len(lead) + 1) + [(0, dhp - dh)]
    return jnp.pad(vr, pad).reshape(lead + (nh * dhp,))


def _unpad_heads(v, nh, dh, dhp):
    if dhp == dh:
        return v
    lead = v.shape[:-1]
    return v.reshape(lead + (nh, dhp))[..., :dh].reshape(lead + (nh * dh,))


def self_attention_block(x, params, num_heads, *, block_b=None,
                         compute_dtype=jnp.bfloat16):
    B, T, H = x.shape
    nh = num_heads
    assert H % nh == 0
    dh = H // nh
    scale = 1.0 / float(np.sqrt(dh))

    # Lane-dense padded layout: pad each head from dh to dhp lanes so
    # Hp = nh*dhp is a multiple of 128 (dense stores, full-width contractions).
    dhp = dh
    while (nh * dhp) % 128:
        dhp += 1
    Hp = nh * dhp

    p = params
    # [out, in] torch weight -> [in_p, out_p] padded kernel weight (zeros in pads)
    pm = lambda w: _pad_heads(_pad_heads(w, nh, dh, dhp).T, nh, dh, dhp)
    pv = lambda v: _pad_heads(v, nh, dh, dhp)

    # Pack everything once wrapper-side (zero kernel cost): Q (scale folded),
    # K, V, FFN-1, FFN-2 into ONE bf16 [Hp, 5Hp] tensor; biases [1, 5Hp] f32;
    # LayerNorm vectors [4, Hp] f32.
    w_pack = jnp.concatenate(
        [pm(p["w1"] * scale), pm(p["w2"]), pm(p["w3"]),
         pm(p["wc1"][:, :, 0]), pm(p["wc2"][:, :, 0])],
        axis=1).astype(compute_dtype)
    b_pack = jnp.concatenate(
        [pv(p["b1"] * scale), pv(p["b2"]), pv(p["b3"]), pv(p["bc1"]), pv(p["bc2"])]
    ).reshape(1, 5 * Hp).astype(jnp.float32)
    ln_pack = jnp.stack([pv(p["gamma1"]), pv(p["beta1"]),
                         pv(p["gamma2"]), pv(p["beta2"])]).astype(jnp.float32)

    w_bytes = 5 * Hp * Hp * jnp.dtype(compute_dtype).itemsize + 9 * Hp * 4
    vmem_cap = _vmem_capacity_bytes()
    n_tc = _tensorcores_per_chip()
    if block_b is None:
        block_b = _choose_block_b(B, T, Hp, nh, w_bytes, vmem_cap, n_tc)

    steps = -(-B // block_b)              # pad the batch instead of shrinking block_b
    Bp = steps * block_b

    x_pad = _pad_heads(x, nh, dh, dhp)
    if Bp > B:
        x_pad = jnp.pad(x_pad, ((0, Bp - B), (0, 0), (0, 0)))

    x_spec = pl.BlockSpec((block_b, T, Hp), lambda b: (b, 0, 0))
    single = pl.Buffered(1)               # grid-invariant operands: single-buffered
    kernel = functools.partial(_sab_kernel, nh, H, compute_dtype)
    vmem_limit = _vmem_limit_bytes(block_b, T, Hp, nh, w_bytes, vmem_cap)

    out = pl.pallas_call(
        kernel,
        out_shape=jax.ShapeDtypeStruct((Bp, T, Hp), x.dtype),
        grid_spec=pltpu.PrefetchScalarGridSpec(
            num_scalar_prefetch=0,
            grid=(steps,),
            in_specs=[x_spec,
                      pl.BlockSpec((Hp, 5 * Hp), lambda b: (0, 0),
                                   pipeline_mode=single),
                      pl.BlockSpec((1, 5 * Hp), lambda b: (0, 0),
                                   pipeline_mode=single),
                      pl.BlockSpec((4, Hp), lambda b: (0, 0),
                                   pipeline_mode=single)],
            out_specs=x_spec,
        ),
        compiler_params=pltpu.CompilerParams(
            dimension_semantics=("parallel",),
            vmem_limit_bytes=vmem_limit),
    )(x_pad, w_pack, b_pack, ln_pack)

    if Bp > B:
        out = out[:B]
    return _unpad_heads(out, nh, dh, dhp)


# ------------------------------- reference -----------------------------------

def reference(x, p, num_heads):
    """Pure-JAX f32 reference of the same forward pass (for a sanity check)."""
    hp = jax.lax.Precision.HIGHEST
    B, T, H = x.shape
    dh = H // num_heads
    q = _layer_norm(x, p["gamma1"], p["beta1"])
    Q = jnp.einsum("btd,hd->bth", q, p["w1"], precision=hp) + p["b1"]
    K = jnp.einsum("btd,hd->bth", x, p["w2"], precision=hp) + p["b2"]
    V = jnp.einsum("btd,hd->bth", x, p["w3"], precision=hp) + p["b3"]
    key_mask = jnp.sign(jnp.abs(jnp.sum(x, -1)))          # [B,T]
    query_mask = jnp.sign(jnp.abs(jnp.sum(q, -1)))        # [B,T]
    tril = jnp.tril(jnp.ones((T, T), jnp.float32))
    outs = []
    for h in range(num_heads):
        lo, hi = h * dh, (h + 1) * dh
        s = jnp.einsum("bqd,bkd->bqk", Q[:, :, lo:hi], K[:, :, lo:hi],
                       precision=hp) / (dh ** 0.5)
        s = jnp.where(key_mask[:, None, :] == 0.0, NEG_PAD, s)
        s = jnp.where(tril[None] == 0.0, NEG_PAD, s)
        pmat = jax.nn.softmax(s, axis=-1) * query_mask[:, :, None]
        outs.append(jnp.einsum("bqk,bkd->bqd", pmat, V[:, :, lo:hi], precision=hp))
    y = jnp.concatenate(outs, axis=-1) + q
    z = _layer_norm(y, p["gamma2"], p["beta2"])
    h1 = jax.nn.relu(jnp.einsum("btd,hd->bth", z, p["wc1"][:, :, 0],
                                precision=hp) + p["bc1"])
    f = jnp.einsum("btd,hd->bth", h1, p["wc2"][:, :, 0], precision=hp) + p["bc2"]
    return f + z


def init_params(key, hidden):
    ks = jax.random.split(key, 14)
    n = lambda k, s: (0.1 * jax.random.normal(k, s)).astype(jnp.float32)
    return {
        # MultiheadAttention Linear layers (PyTorch weight shape: [out, in])
        "w1": n(ks[0], (hidden, hidden)), "b1": n(ks[1], (hidden,)),
        "w2": n(ks[2], (hidden, hidden)), "b2": n(ks[3], (hidden,)),
        "w3": n(ks[4], (hidden, hidden)), "b3": n(ks[5], (hidden,)),
        # LayerNorms (perturbed from ones/zeros to keep the mask math non-degenerate)
        "gamma1": 1.0 + n(ks[6], (hidden,)), "beta1": n(ks[7], (hidden,)),
        "gamma2": 1.0 + n(ks[8], (hidden,)), "beta2": n(ks[9], (hidden,)),
        # Feedforward Conv1d(k=1) layers (PyTorch weight shape: [out, in, 1])
        "wc1": n(ks[10], (hidden, hidden))[:, :, None], "bc1": n(ks[11], (hidden,)),
        "wc2": n(ks[12], (hidden, hidden))[:, :, None], "bc2": n(ks[13], (hidden,)),
    }


if __name__ == "__main__":
    B, T, H, HEADS = 2, 8, 32, 4
    key = jax.random.PRNGKey(0)
    kx, kp = jax.random.split(key)
    x = jax.random.normal(kx, (B, T, H), dtype=jnp.float32)
    params = init_params(kp, H)

    out = jax.block_until_ready(self_attention_block(x, params, HEADS))
    assert out.shape == (B, T, H)

    ref = jax.block_until_ready(reference(x, params, HEADS))
    # Kernel matmuls run in bf16 on the MXU (f32 accumulation) -> loose tolerance.
    np.testing.assert_allclose(np.asarray(out), np.asarray(ref),
                               rtol=5e-2, atol=5e-2)
    print("KERNEL_OK")
</pallas_src>

<mosaic_0001>
module attributes {stable_mosaic.version = 11 : i64} {
  func.func @_sab_kernel(%arg0: i32, %arg1: memref<2x8x128xf32, #tpu.memory_space<vmem>>, %arg2: memref<128x640xbf16, #tpu.memory_space<vmem>>, %arg3: memref<1x640xf32, #tpu.memory_space<vmem>>, %arg4: memref<4x128xf32, #tpu.memory_space<vmem>>, %arg5: memref<2x8x128xf32, #tpu.memory_space<vmem>>) attributes {dimension_semantics = [#tpu.dimension_semantics<parallel>], iteration_bounds = array<i64: 1>, scalar_prefetch = 0 : i64, scratch_operands = 0 : i64, tpu.core_type = #tpu.core_type<tc>, window_params = [{transform_indices = @transform_0, window_bounds = array<i64: 2, 8, 128>}, {pipeline_mode = #tpu.pipeline_mode<synchronous>, transform_indices = @transform_1, window_bounds = array<i64: 128, 640>}, {pipeline_mode = #tpu.pipeline_mode<synchronous>, transform_indices = @transform_2, window_bounds = array<i64: 1, 640>}, {pipeline_mode = #tpu.pipeline_mode<synchronous>, transform_indices = @transform_3, window_bounds = array<i64: 4, 128>}, {transform_indices = @transform_4, window_bounds = array<i64: 2, 8, 128>}]} {
    %c0 = arith.constant 0 : index
    %c0_0 = arith.constant 0 : index
    %c0_1 = arith.constant 0 : index
    %0 = vector.load %arg1[%c0, %c0_0, %c0_1] : memref<2x8x128xf32, #tpu.memory_space<vmem>>, vector<2x8x128xf32>
    %1 = vector.shape_cast %0 : vector<2x8x128xf32> to vector<16x128xf32>
    %2 = tpu.iota {dimensions = array<i32: 1>} : vector<1x128xi32>
    %c32_i32 = arith.constant 32 : i32
    %c0_i32 = arith.constant 0 : i32
    %3 = arith.cmpi eq, %c32_i32, %c0_i32 : i32
    %c1_i32 = arith.constant 1 : i32
    %4 = arith.select %3, %c1_i32, %c32_i32 : i32
    %5 = vector.broadcast %4 : i32 to vector<1x128xi32>
    %6 = arith.remsi %2, %5 : vector<1x128xi32>
    %c0_i32_2 = arith.constant 0 : i32
    %7 = vector.broadcast %c0_i32_2 : i32 to vector<1x128xi32>
    %8 = arith.cmpi ne, %6, %7 : vector<1x128xi32>
    %c0_i32_3 = arith.constant 0 : i32
    %9 = vector.broadcast %c0_i32_3 : i32 to vector<1x128xi32>
    %10 = arith.cmpi slt, %6, %9 : vector<1x128xi32>
    %c0_i32_4 = arith.constant 0 : i32
    %11 = arith.cmpi slt, %4, %c0_i32_4 : i32
    %12 = vector.broadcast %11 : i1 to vector<1x128xi1>
    %13 = vector.broadcast %12 : vector<1x128xi1> to vector<1x128xi1>
    %14 = arith.xori %10, %13 : vector<1x128xi1>
    %15 = arith.andi %14, %8 : vector<1x128xi1>
    %16 = vector.broadcast %4 : i32 to vector<1x128xi32>
    %17 = arith.addi %6, %16 : vector<1x128xi32>
    %18 = arith.select %15, %17, %6 : vector<1x128xi1>, vector<1x128xi32>
    %c8_i32 = arith.constant 8 : i32
    %19 = vector.broadcast %c8_i32 : i32 to vector<1x128xi32>
    %20 = arith.cmpi slt, %18, %19 : vector<1x128xi32>
    %21 = arith.extui %20 : vector<1x128xi1> to vector<1x128xi32>
    %22 = arith.sitofp %21 : vector<1x128xi32> to vector<1x128xf32>
    %c0_5 = arith.constant 0 : index
    %c0_6 = arith.constant 0 : index
    %23 = vector.load %arg4[%c0_5, %c0_6] : memref<4x128xf32, #tpu.memory_space<vmem>>, vector<1x128xf32>
    %c1 = arith.constant 1 : index
    %c0_7 = arith.constant 0 : index
    %24 = vector.load %arg4[%c1, %c0_7] : memref<4x128xf32, #tpu.memory_space<vmem>>, vector<1x128xf32>
    %c2 = arith.constant 2 : index
    %c0_8 = arith.constant 0 : index
    %25 = vector.load %arg4[%c2, %c0_8] : memref<4x128xf32, #tpu.memory_space<vmem>>, vector<1x128xf32>
    %c3 = arith.constant 3 : index
    %c0_9 = arith.constant 0 : index
    %26 = vector.load %arg4[%c3, %c0_9] : memref<4x128xf32, #tpu.memory_space<vmem>>, vector<1x128xf32>
    %cst = arith.constant dense<0.000000e+00> : vector<16xf32>
    %27 = vector.multi_reduction <add>, %1, %cst [1] : vector<16x128xf32> to vector<16xf32>
    %28 = vector.shape_cast %27 : vector<16xf32> to vector<16x1xf32>
    %cst_10 = arith.constant 3.125000e-02 : f32
    %29 = vector.broadcast %cst_10 : f32 to vector<16x1xf32>
    %30 = arith.mulf %28, %29 : vector<16x1xf32>
    %31 = vector.broadcast %30 : vector<16x1xf32> to vector<16x128xf32>
    %32 = arith.subf %1, %31 : vector<16x128xf32>
    %33 = vector.broadcast %22 : vector<1x128xf32> to vector<16x128xf32>
    %34 = arith.mulf %32, %33 : vector<16x128xf32>
    %35 = arith.mulf %34, %34 : vector<16x128xf32>
    %cst_11 = arith.constant dense<0.000000e+00> : vector<16xf32>
    %36 = vector.multi_reduction <add>, %35, %cst_11 [1] : vector<16x128xf32> to vector<16xf32>
    %37 = vector.shape_cast %36 : vector<16xf32> to vector<16x1xf32>
    %cst_12 = arith.constant 0.0322580636 : f32
    %38 = vector.broadcast %cst_12 : f32 to vector<16x1xf32>
    %39 = arith.mulf %37, %38 : vector<16x1xf32>
    %cst_13 = arith.constant 9.99999993E-9 : f32
    %40 = vector.broadcast %cst_13 : f32 to vector<16x1xf32>
    %41 = arith.addf %39, %40 : vector<16x1xf32>
    %42 = math.rsqrt %41 : vector<16x1xf32>
    %43 = vector.broadcast %42 : vector<16x1xf32> to vector<16x128xf32>
    %44 = arith.mulf %34, %43 : vector<16x128xf32>
    %45 = vector.broadcast %23 : vector<1x128xf32> to vector<16x128xf32>
    %46 = arith.mulf %45, %44 : vector<16x128xf32>
    %47 = vector.broadcast %24 : vector<1x128xf32> to vector<16x128xf32>
    %48 = arith.addf %46, %47 : vector<16x128xf32>
    %49 = arith.truncf %48 : vector<16x128xf32> to vector<16x128xbf16>
    %50 = arith.truncf %1 : vector<16x128xf32> to vector<16x128xbf16>
    %c0_14 = arith.constant 0 : index
    %c0_15 = arith.constant 0 : index
    %51 = vector.load %arg2[%c0_14, %c0_15] : memref<128x640xbf16, #tpu.memory_space<vmem>>, vector<128x128xbf16>
    %cst_16 = arith.constant dense<0.000000e+00> : vector<16x128xf32>
    %52 = tpu.matmul %49, %51, %cst_16 {dimension_numbers = #tpu.dot_dimension_numbers<[1], [0], [0], [1], [0, 0, 1, 1], [], []>} : vector<16x128xbf16>, vector<128x128xbf16>, vector<16x128xf32> -> vector<16x128xf32>
    %c0_17 = arith.constant 0 : index
    %c0_18 = arith.constant 0 : index
    %53 = vector.load %arg3[%c0_17, %c0_18] : memref<1x640xf32, #tpu.memory_space<vmem>>, vector<1x128xf32>
    %54 = vector.broadcast %53 : vector<1x128xf32> to vector<16x128xf32>
    %55 = arith.addf %52, %54 : vector<16x128xf32>
    %c0_19 = arith.constant 0 : index
    %c128 = arith.constant 128 : index
    %56 = vector.load %arg2[%c0_19, %c128] : memref<128x640xbf16, #tpu.memory_space<vmem>>, vector<128x256xbf16>
    %cst_20 = arith.constant dense<0.000000e+00> : vector<16x256xf32>
    %57 = tpu.matmul %50, %56, %cst_20 {dimension_numbers = #tpu.dot_dimension_numbers<[1], [0], [0], [1], [0, 0, 1, 1], [], []>} : vector<16x128xbf16>, vector<128x256xbf16>, vector<16x256xf32> -> vector<16x256xf32>
    %c0_21 = arith.constant 0 : index
    %c128_22 = arith.constant 128 : index
    %58 = vector.load %arg3[%c0_21, %c128_22] : memref<1x640xf32, #tpu.memory_space<vmem>>, vector<1x256xf32>
    %59 = vector.broadcast %58 : vector<1x256xf32> to vector<16x256xf32>
    %60 = arith.addf %57, %59 : vector<16x256xf32>
    %61 = vector.extract_strided_slice %60 {offsets = [0, 0], sizes = [16, 128], strides = [1, 1]} : vector<16x256xf32> to vector<16x128xf32>
    %62 = vector.extract_strided_slice %60 {offsets = [0, 128], sizes = [16, 128], strides = [1, 1]} : vector<16x256xf32> to vector<16x128xf32>
    %cst_23 = arith.constant dense<0.000000e+00> : vector<2x8xf32>
    %63 = vector.multi_reduction <add>, %0, %cst_23 [2] : vector<2x8x128xf32> to vector<2x8xf32>
    %64 = vector.shape_cast %63 : vector<2x8xf32> to vector<2x8x1xf32>
    %65 = tpu.transpose %64, [0, 2, 1] : vector<2x8x1xf32> -> vector<2x1x8xf32>
    %cst_24 = arith.constant 0.000000e+00 : f32
    %66 = vector.broadcast %cst_24 : f32 to vector<2x1x8xf32>
    %67 = arith.cmpf one, %65, %66 : vector<2x1x8xf32>
    %68 = tpu.iota {dimensions = array<i32: 0>} : vector<8x8xi32>
    %69 = tpu.iota {dimensions = array<i32: 1>} : vector<8x8xi32>
    %70 = arith.cmpi sge, %68, %69 : vector<8x8xi32>
    %71 = vector.shape_cast %70 : vector<8x8xi1> to vector<1x8x8xi1>
    %72 = vector.broadcast %67 : vector<2x1x8xi1> to vector<2x8x8xi1>
    %73 = vector.broadcast %71 : vector<1x8x8xi1> to vector<2x8x8xi1>
    %74 = arith.andi %72, %73 : vector<2x8x8xi1>
    %75 = arith.extui %74 : vector<2x8x8xi1> to vector<2x8x8xi32>
    %76 = arith.sitofp %75 : vector<2x8x8xi32> to vector<2x8x8xf32>
    %cst_25 = arith.constant dense<0.000000e+00> : vector<16xf32>
    %77 = vector.multi_reduction <add>, %48, %cst_25 [1] : vector<16x128xf32> to vector<16xf32>
    %78 = vector.shape_cast %77 : vector<16xf32> to vector<16x1xf32>
    %79 = vector.shape_cast %78 : vector<16x1xf32> to vector<2x1x8x1xf32>
    %cst_26 = arith.constant 0.000000e+00 : f32
    %80 = vector.broadcast %cst_26 : f32 to vector<2x1x8x1xf32>
    %81 = arith.cmpf one, %79, %80 : vector<2x1x8x1xf32>
    %82 = arith.extui %81 : vector<2x1x8x1xi1> to vector<2x1x8x1xi32>
    %83 = arith.sitofp %82 : vector<2x1x8x1xi32> to vector<2x1x8x1xf32>
    %84 = vector.shape_cast %55 : vector<16x128xf32> to vector<2x8x4x32xf32>
    %85 = tpu.transpose %84, [0, 2, 1, 3] : vector<2x8x4x32xf32> -> vector<2x4x8x32xf32>
    %86 = vector.shape_cast %85 : vector<2x4x8x32xf32> to vector<8x8x32xf32>
    %87 = arith.truncf %86 : vector<8x8x32xf32> to vector<8x8x32xbf16>
    %88 = vector.shape_cast %61 : vector<16x128xf32> to vector<2x8x4x32xf32>
    %89 = tpu.transpose %88, [0, 2, 1, 3] : vector<2x8x4x32xf32> -> vector<2x4x8x32xf32>
    %90 = vector.shape_cast %89 : vector<2x4x8x32xf32> to vector<8x8x32xf32>
    %91 = arith.truncf %90 : vector<8x8x32xf32> to vector<8x8x32xbf16>
    %92 = vector.shape_cast %62 : vector<16x128xf32> to vector<2x8x4x32xf32>
    %93 = tpu.transpose %92, [0, 2, 1, 3] : vector<2x8x4x32xf32> -> vector<2x4x8x32xf32>
    %94 = vector.shape_cast %93 : vector<2x4x8x32xf32> to vector<8x8x32xf32>
    %95 = arith.truncf %94 : vector<8x8x32xf32> to vector<8x8x32xbf16>
    "tpu.trace_start"() <{level = 10 : i32, message = "bqd,bkd->bqk"}> : () -> ()
    %cst_27 = arith.constant dense<0.000000e+00> : vector<8x8x8xf32>
    %96 = tpu.matmul %87, %91, %cst_27 {dimension_numbers = #tpu.dot_dimension_numbers<[2], [2], [1], [1], [0, 0, 0, 1, 1, 1], [0], [0]>} : vector<8x8x32xbf16>, vector<8x8x32xbf16>, vector<8x8x8xf32> -> vector<8x8x8xf32>
    "tpu.trace_stop"() : () -> ()
    %97 = vector.shape_cast %96 : vector<8x8x8xf32> to vector<2x4x8x8xf32>
    %cst_28 = arith.constant dense<0xFF800000> : vector<2x4x8xf32>
    %98 = vector.multi_reduction <maximumf>, %97, %cst_28 [3] : vector<2x4x8x8xf32> to vector<2x4x8xf32>
    %99 = vector.shape_cast %98 : vector<2x4x8xf32> to vector<2x4x8x1xf32>
    %100 = vector.broadcast %99 : vector<2x4x8x1xf32> to vector<2x4x8x8xf32>
    %101 = arith.subf %97, %100 : vector<2x4x8x8xf32>
    %102 = math.exp %101 : vector<2x4x8x8xf32>
    %103 = vector.shape_cast %76 : vector<2x8x8xf32> to vector<2x1x8x8xf32>
    %104 = vector.broadcast %103 : vector<2x1x8x8xf32> to vector<2x4x8x8xf32>
    %105 = arith.mulf %102, %104 : vector<2x4x8x8xf32>
    %cst_29 = arith.constant dense<0.000000e+00> : vector<2x4x8xf32>
    %106 = vector.multi_reduction <add>, %105, %cst_29 [3] : vector<2x4x8x8xf32> to vector<2x4x8xf32>
    %107 = vector.shape_cast %106 : vector<2x4x8xf32> to vector<2x4x8x1xf32>
    %cst_30 = arith.constant 1.000000e-30 : f32
    %108 = vector.broadcast %cst_30 : f32 to vector<2x4x8x1xf32>
    %109 = arith.addf %107, %108 : vector<2x4x8x1xf32>
    %110 = tpu.reciprocal %109 {approx = true} : vector<2x4x8x1xf32> -> vector<2x4x8x1xf32>
    %111 = vector.broadcast %83 : vector<2x1x8x1xf32> to vector<2x4x8x1xf32>
    %112 = arith.mulf %110, %111 : vector<2x4x8x1xf32>
    %113 = vector.broadcast %112 : vector<2x4x8x1xf32> to vector<2x4x8x8xf32>
    %114 = arith.mulf %105, %113 : vector<2x4x8x8xf32>
    %115 = vector.shape_cast %114 : vector<2x4x8x8xf32> to vector<8x8x8xf32>
    %116 = arith.truncf %115 : vector<8x8x8xf32> to vector<8x8x8xbf16>
    "tpu.trace_start"() <{level = 10 : i32, message = "bqk,bkd->bqd"}> : () -> ()
    %cst_31 = arith.constant dense<0.000000e+00> : vector<8x8x32xf32>
    %117 = tpu.matmul %116, %95, %cst_31 {dimension_numbers = #tpu.dot_dimension_numbers<[2], [1], [1], [2], [0, 0, 0, 1, 1, 2], [0], [0]>} : vector<8x8x8xbf16>, vector<8x8x32xbf16>, vector<8x8x32xf32> -> vector<8x8x32xf32>
    "tpu.trace_stop"() : () -> ()
    %118 = vector.shape_cast %117 : vector<8x8x32xf32> to vector<2x4x8x32xf32>
    %119 = tpu.transpose %118, [0, 2, 1, 3] : vector<2x4x8x32xf32> -> vector<2x8x4x32xf32>
    %120 = vector.shape_cast %119 : vector<2x8x4x32xf32> to vector<16x128xf32>
    %121 = arith.addf %120, %48 : vector<16x128xf32>
    %cst_32 = arith.constant dense<0.000000e+00> : vector<16xf32>
    %122 = vector.multi_reduction <add>, %121, %cst_32 [1] : vector<16x128xf32> to vector<16xf32>
    %123 = vector.shape_cast %122 : vector<16xf32> to vector<16x1xf32>
    %cst_33 = arith.constant 3.125000e-02 : f32
    %124 = vector.broadcast %cst_33 : f32 to vector<16x1xf32>
    %125 = arith.mulf %123, %124 : vector<16x1xf32>
    %126 = vector.broadcast %125 : vector<16x1xf32> to vector<16x128xf32>
    %127 = arith.subf %121, %126 : vector<16x128xf32>
    %128 = vector.broadcast %22 : vector<1x128xf32> to vector<16x128xf32>
    %129 = arith.mulf %127, %128 : vector<16x128xf32>
    %130 = arith.mulf %129, %129 : vector<16x128xf32>
    %cst_34 = arith.constant dense<0.000000e+00> : vector<16xf32>
    %131 = vector.multi_reduction <add>, %130, %cst_34 [1] : vector<16x128xf32> to vector<16xf32>
    %132 = vector.shape_cast %131 : vector<16xf32> to vector<16x1xf32>
    %cst_35 = arith.constant 0.0322580636 : f32
    %133 = vector.broadcast %cst_35 : f32 to vector<16x1xf32>
    %134 = arith.mulf %132, %133 : vector<16x1xf32>
    %cst_36 = arith.constant 9.99999993E-9 : f32
    %135 = vector.broadcast %cst_36 : f32 to vector<16x1xf32>
    %136 = arith.addf %134, %135 : vector<16x1xf32>
    %137 = math.rsqrt %136 : vector<16x1xf32>
    %138 = vector.broadcast %137 : vector<16x1xf32> to vector<16x128xf32>
    %139 = arith.mulf %129, %138 : vector<16x128xf32>
    %140 = vector.broadcast %25 : vector<1x128xf32> to vector<16x128xf32>
    %141 = arith.mulf %140, %139 : vector<16x128xf32>
    %142 = vector.broadcast %26 : vector<1x128xf32> to vector<16x128xf32>
    %143 = arith.addf %141, %142 : vector<16x128xf32>
    %144 = arith.truncf %143 : vector<16x128xf32> to vector<16x128xbf16>
    %c0_37 = arith.constant 0 : index
    %c384 = arith.constant 384 : index
    %145 = vector.load %arg2[%c0_37, %c384] : memref<128x640xbf16, #tpu.memory_space<vmem>>, vector<128x128xbf16>
    %cst_38 = arith.constant dense<0.000000e+00> : vector<16x128xf32>
    %146 = tpu.matmul %144, %145, %cst_38 {dimension_numbers = #tpu.dot_dimension_numbers<[1], [0], [0], [1], [0, 0, 1, 1], [], []>} : vector<16x128xbf16>, vector<128x128xbf16>, vector<16x128xf32> -> vector<16x128xf32>
    %c0_39 = arith.constant 0 : index
    %c384_40 = arith.constant 384 : index
    %147 = vector.load %arg3[%c0_39, %c384_40] : memref<1x640xf32, #tpu.memory_space<vmem>>, vector<1x128xf32>
    %148 = vector.broadcast %147 : vector<1x128xf32> to vector<16x128xf32>
    %149 = arith.addf %146, %148 : vector<16x128xf32>
    %cst_41 = arith.constant 0.000000e+00 : f32
    %150 = vector.broadcast %cst_41 : f32 to vector<16x128xf32>
    %151 = arith.maximumf %149, %150 : vector<16x128xf32>
    %152 = arith.truncf %151 : vector<16x128xf32> to vector<16x128xbf16>
    %c0_42 = arith.constant 0 : index
    %c512 = arith.constant 512 : index
    %153 = vector.load %arg2[%c0_42, %c512] : memref<128x640xbf16, #tpu.memory_space<vmem>>, vector<128x128xbf16>
    %cst_43 = arith.constant dense<0.000000e+00> : vector<16x128xf32>
    %154 = tpu.matmul %152, %153, %cst_43 {dimension_numbers = #tpu.dot_dimension_numbers<[1], [0], [0], [1], [0, 0, 1, 1], [], []>} : vector<16x128xbf16>, vector<128x128xbf16>, vector<16x128xf32> -> vector<16x128xf32>
    %c0_44 = arith.constant 0 : index
    %c512_45 = arith.constant 512 : index
    %155 = vector.load %arg3[%c0_44, %c512_45] : memref<1x640xf32, #tpu.memory_space<vmem>>, vector<1x128xf32>
    %156 = vector.broadcast %155 : vector<1x128xf32> to vector<16x128xf32>
    %157 = arith.addf %154, %156 : vector<16x128xf32>
    %158 = arith.addf %157, %143 : vector<16x128xf32>
    %159 = vector.shape_cast %158 : vector<16x128xf32> to vector<2x8x128xf32>
    %c0_46 = arith.constant 0 : index
    %c0_47 = arith.constant 0 : index
    %c0_48 = arith.constant 0 : index
    %160 = vector.load %arg5[%c0_46, %c0_47, %c0_48] : memref<2x8x128xf32, #tpu.memory_space<vmem>>, vector<2x8x128xf32>
    tpu.vector_store %arg5[%c0_46, %c0_47, %c0_48], %159 {strides = array<i32>} : memref<2x8x128xf32, #tpu.memory_space<vmem>>, vector<2x8x128xf32>,
    return
  }
  func.func @transform_0(%arg0: i32) -> (i32, i32, i32) {
    %c0_i32 = arith.constant 0 : i32
    %c0_i32_0 = arith.constant 0 : i32
    %c0_i32_1 = arith.constant 0 : i32
    return %arg0, %c0_i32, %c0_i32_0 : i32, i32, i32
  }
  func.func @transform_1(%arg0: i32) -> (i32, i32) {
    %c0_i32 = arith.constant 0 : i32
    %c0_i32_0 = arith.constant 0 : i32
    %c0_i32_1 = arith.constant 0 : i32
    return %c0_i32, %c0_i32_0 : i32, i32
  }
  func.func @transform_2(%arg0: i32) -> (i32, i32) {
    %c0_i32 = arith.constant 0 : i32
    %c0_i32_0 = arith.constant 0 : i32
    %c0_i32_1 = arith.constant 0 : i32
    return %c0_i32, %c0_i32_0 : i32, i32
  }
  func.func @transform_3(%arg0: i32) -> (i32, i32) {
    %c0_i32 = arith.constant 0 : i32
    %c0_i32_0 = arith.constant 0 : i32
    %c0_i32_1 = arith.constant 0 : i32
    return %c0_i32, %c0_i32_0 : i32, i32
  }
  func.func @transform_4(%arg0: i32) -> (i32, i32, i32) {
    %c0_i32 = arith.constant 0 : i32
    %c0_i32_0 = arith.constant 0 : i32
    %c0_i32_1 = arith.constant 0 : i32
    return %arg0, %c0_i32, %c0_i32_0 : i32, i32, i32
  }
}

</mosaic_0001>

<bundles_post_ra>
// kernel: tpu_custom_call.1
= control target key start
LH: loop header
LB: loop body
LE: loop exit
PB: predicated region body
PF: predicated region fallthrough
CT: control target
= control target key end

     0   :  { %9 = vsyncpa [#allocation3], 0  ;;  %s3844_s0 = inlined_call_operand.hbm [shape: f32[2,8,128], index: 0, kind: input, shape index: {}]   ;;  %s3845_s1 = inlined_call_operand.hbm [shape: bf16[128,640], index: 1, kind: input, shape index: {}]   ;;  %s3846_s2 = inlined_call_operand.vmem [shape: f32[1,640], index: 2, kind: input, shape index: {}]   ;;  %s3847_s3 = inlined_call_operand.vmem [shape: f32[4,128], index: 3, kind: input, shape index: {}]   ;;  %s3848_s4 = inlined_call_operand.hbm [shape: f32[2,8,128], index: 4, kind: output, shape index: {}]  }
   0x1   :  { %10 = vsyncpa [#allocation6], 0 }
   0x2   :  { %11 = vsyncpa [#allocation4], 0  ;;  %s3295_s15 = smov [#allocation2]   ;;  %s3223_s19 = scalar_lea.hbm %s3844_s0, 256 }
   0x3   :  { %s17_s16 = sshll.u32 %s3295_s15, 4  ;;  %p3224_p0 = scmp.ne.s32.totalorder %s3844_s0, %s3223_s19  ;;  %s18_s16 = int_to_ptr.vmem [resolvable:$true] %s17_s16 }
   0x4   :  { %p3227_p1 = scmp.lt.u32.totalorder %s3223_s19, %s3844_s0 }
   0x6   :  { %p3229_p2 = pnand %p3227_p1, %p3224_p0 }
   0x8   :  { %3232 = shalt.err (!%p3229_p2)
}
   0x9   :  { %s3233_s24 = scalar_lea.vmem %s18_s16, 256  ;;  %p3238_p4 = scmp.lt.s32.totalorder %s18_s16, %s18_s16 }
   0xa   :  { %p3234_p3 = scmp.ne.s32.totalorder %s18_s16, %s3233_s24  ;;  %p3239_p5 = scmp.lt.s32.totalorder %s3233_s24, %s3233_s24 }
   0xc   :  { %p3240_p6 = por %p3239_p5, %p3238_p4 }
   0xe   :  { %p3241_p7 = pnand %p3240_p6, %p3234_p3 }
  0x10   :  { %3244 = shalt.err (!%p3241_p7)
}
  0x11   :  { %s3296_s25 = smov 128   ;;  %s3297_s26 = smov 8  }
  0x12   :  { %23 = dma.hbm_to_vmem [thread:$0]  %s3844_s0, 256, %s18_s16, [#allocation3], %s3296_s25, %s3296_s25, %s3297_s26  }
  0x13   :  { %s3298_s29 = smov [#allocation5]   ;;  %s3245_s7 = scalar_lea.hbm %s3845_s1, 5120 }
  0x14   :  { %s29_s30 = sshll.u32 %s3298_s29, 4  ;;  %p3246_p8 = scmp.ne.s32.totalorder %s3845_s1, %s3245_s7  ;;  %s30_s30 = int_to_ptr.vmem [resolvable:$true] %s29_s30 }
  0x15   :  { %p3249_p9 = scmp.lt.u32.totalorder %s3245_s7, %s3845_s1 }
  0x17   :  { %p3251_p10 = pnand %p3249_p9, %p3246_p8 }
  0x19   :  { %3254 = shalt.err (!%p3251_p10)
}
  0x1a   :  { %s3255_s12 = scalar_lea.vmem %s30_s30, 5120  ;;  %p3260_p12 = scmp.lt.s32.totalorder %s30_s30, %s30_s30 }
  0x1b   :  { %p3256_p11 = scmp.ne.s32.totalorder %s30_s30, %s3255_s12  ;;  %p3261_p13 = scmp.lt.s32.totalorder %s3255_s12, %s3255_s12 }
  0x1d   :  { %p3262_p0 = por %p3261_p13, %p3260_p12 }
  0x1f   :  { %p3263_p1 = pnand %p3262_p0, %p3256_p11 }
  0x21   :  { %3266 = shalt.err (!%p3263_p1)
}
  0x22   :  { %s3299_s0 = smov 320   ;;  %s3300_s13 = smov 20  }
  0x23   :  { %35 = dma.hbm_to_vmem [thread:$0]  %s3845_s1, 5120, %s30_s30, [#allocation6], %s3299_s0, %s3299_s0, %s3300_s13  }
  0x24   :  { %3289 = dma.done.wait [#allocation3], 256  }
  0x25   :  { %3290 = vsyncadd [#allocation3], 4294967040 }
  0x26   :  { %3291 = dma.done.wait [#allocation6], 5120  }
  0x27   :  { %3292 = vsyncadd [#allocation6], 4294962176  ;;  %v47_v0 = vld [vmem:[#allocation2] sm:$0xff]  ;;  %v48_v1 = vld [vmem:[#allocation2 + $0x8] sm:$0xff]  ;;  %v3301_v2 = vmov 0.0   ;;  %v3302_v9 = vmov 0   ;;  %v49_v22 = vlaneseq }
  0x28   :  { %70 = vadd.xlane.f32.xlu0 %v47_v0  ;;  %2964 = vmatprep.subr.bf16.mxu0 %v3301_v2  ;;  %v3135_v3 = vld [vmem:[#allocation5 + $0x8] ss:$20 sps:$4 sm:$0xff]   ;;  %v3137_v4 = vld [vmem:[#allocation5 + $0x4] ss:$20 sps:$4 sm:$0xff]   ;;  %v3140_v6 = vld [vmem:[#allocation5 + $0x2c] ss:$20 sps:$4 sm:$0xff]   ;;  %v107_v21 = vpack.c.bf16 %v48_v1, %v47_v0 }
  0x29   :  { %v3138_v5 = vld [vmem:[#allocation5 + $0x30] ss:$20 sps:$4 sm:$0xff]   ;;  %328 = vmatprep.subr.bf16.mxu1 %v3135_v3  ;;  %v3141_v7 = vld [vmem:[#allocation5 + $0x58] ss:$20 sps:$4 sm:$0xff]   ;;  %v3159_v8 = vld [vmem:[#allocation5] ss:$20 sps:$4 sm:$0xff]   ;;  %360 = vmatprep.mubr.bf16.mxu1 %v3302_v9 }
  0x2a   :  { %329 = vmatpush1.bf16.msra.mxu1 %v3137_v4  ;;  %v3143_v10 = vld [vmem:[#allocation5 + $0x54] ss:$20 sps:$4 sm:$0xff]   ;;  %2965 = vmatpush3.bf16.msra.mxu0 %v3159_v8  ;;  %v3146_v12 = vld [vmem:[#allocation5 + $0x7c] ss:$20 sps:$4 sm:$0xff]   ;;  %v3149_v14 = vld [vmem:[#allocation5 + $0xa4] ss:$20 sps:$4 sm:$0xff]  }
  0x2b   :  { %330 = vmatprep.subr.bf16.mxu1 %v3138_v5  ;;  %v3144_v11 = vld [vmem:[#allocation5 + $0x80] ss:$20 sps:$4 sm:$0xff]   ;;  %2966 = vmatprep.subr.bf16.mxu0 %v3301_v2  ;;  %v3147_v13 = vld [vmem:[#allocation5 + $0xa8] ss:$20 sps:$4 sm:$0xff]   ;;  %v3150_v15 = vld [vmem:[#allocation5 + $0xd0] ss:$20 sps:$4 sm:$0xff]  }
  0x2c   :  { %72 = vadd.xlane.f32.xlu0 %v48_v1  ;;  %v3152_v16 = vld [vmem:[#allocation5 + $0xcc] ss:$20 sps:$4 sm:$0xff]   ;;  %v3155_v18 = vld [vmem:[#allocation5 + $0xf4] ss:$20 sps:$4 sm:$0xff]   ;;  %v3158_v20 = vld [vmem:[#allocation5 + $0x11c] ss:$20 sps:$4 sm:$0xff]  }
  0x2d   :  { %v3153_v17 = vld [vmem:[#allocation5 + $0xf8] ss:$20 sps:$4 sm:$0xff]   ;;  %v3156_v19 = vld [vmem:[#allocation5 + $0x120] ss:$20 sps:$4 sm:$0xff]   ;;  %v3366_v23 = vand.u32 127, %v49_v22  ;;  %vm3303_vm1 = vmmov 0  }
  0x2e   :  { %331 = vmatpush1.bf16.msra.mxu1 %v3140_v6  ;;  %v3160_v36 = vld [vmem:[#allocation5 + $0x28] ss:$20 sps:$4 sm:$0xff]   ;;  %v3161_v37 = vld [vmem:[#allocation5 + $0x50] ss:$20 sps:$4 sm:$0xff]   ;;  %v3162_v38 = vld [vmem:[#allocation5 + $0x78] ss:$20 sps:$4 sm:$0xff]   ;;  %2980 = vmatprep.mubr.msk.bf16.mxu0 %vm3303_vm1, %v3301_v2 }
  0x2f   :  { %332 = vmatprep.subr.bf16.mxu1 %v3141_v7  ;;  %v55_v24 = vand.u32 31, %v3366_v23  ;;  %2967 = vmatpush3.bf16.msra.mxu0 %v3160_v36  ;;  %v3163_v39 = vld [vmem:[#allocation5 + $0xa0] ss:$20 sps:$4 sm:$0xff]   ;;  %v3164_v40 = vld [vmem:[#allocation5 + $0xc8] ss:$20 sps:$4 sm:$0xff]   ;;  %v3391_v43 = vshrl.u32 %v49_v22, 7 }
  0x30   :  { %2968 = vmatprep.subr.bf16.mxu0 %v3301_v2  ;;  %v3165_v41 = vld [vmem:[#allocation5 + $0xf0] ss:$20 sps:$4 sm:$0xff]   ;;  %v3166_v42 = vld [vmem:[#allocation5 + $0x118] ss:$20 sps:$4 sm:$0xff]   ;;  %s3304_s17 = smov 64   ;;  %s3305_s18 = smov 96  }
  0x31   :  { %vm63_vm0 = vcmp.lt.s32.totalorder %v55_v24, 8  ;;  %v3394_v44 = vsub.s32 0, %v3391_v43  ;;  %v236_v45 = vld [vmem:[%s3846_s2 + $0x1] sm:$0x3]  ;;  %v244_v46 = vsub.s32 1, %v3391_v43  ;;  %s3306_s19 = smov 32   ;;  %vm439_vm5 = vcmp.ge.s32.totalorder %v3391_v43, %v3366_v23 }
  0x32   :  { %333 = vmatpush1.bf16.msra.mxu1 %v3143_v10  ;;  %v3373_v27 = vsel %vm63_vm0, 1.0, %v3301_v2  ;;  %v2823_v6 = vld [vmem:[%s3847_s3 + $0x1] ss:$0 sm:$0xff]  ;;  %vm1370_vm2 = vcmask 261120   ;;  %vm1739_vm3 = vcmask 64512   ;;  %vm1863_vm11 = vcmask 1043456  }
  0x33   :  { %334 = vmatprep.subr.bf16.mxu1 %v3144_v11  ;;  %2969 = vmatpush3.bf16.msra.mxu0 %v3161_v37  ;;  %v241_v47 = vrot.slane %v236_v45, %v3394_v44  ;;  %v245_v48 = vrot.slane %v236_v45, %v244_v46  ;;  %vm2527_vm14 = vcmask 523264   ;;  %vm2530_vm15 = vcmask 785408   ;;  %s3309_s9 = smov [#allocation7]  }
  0x34   :  { %2970 = vmatprep.subr.bf16.mxu0 %v3301_v2  ;;  %s2808_s10 = sshll.u32 %s3309_s9, 4  ;;  %s2809_s10 = int_to_ptr.vmem [resolvable:$true] %s2808_s10 }
  0x35   :  { %s3267_s11 = scalar_lea.vmem %s2809_s10, 256  ;;  %p3272_p3 = scmp.lt.s32.totalorder %s2809_s10, %s2809_s10 }
  0x36   :  { %335 = vmatpush1.bf16.msra.mxu1 %v3146_v12  ;;  %v3307_v12 = vmov 1983009808   ;;  %p3268_p2 = scmp.ne.s32.totalorder %s2809_s10, %s3267_s11  ;;  %p3273_p4 = scmp.lt.s32.totalorder %s3267_s11, %s3267_s11 }
  0x37   :  { %336 = vmatprep.subr.bf16.mxu1 %v3147_v13  ;;  %2971 = vmatpush3.bf16.msra.mxu0 %v3162_v38  ;;  %v493_v13 = vunpack.c.l.s4 %v3307_v12  ;;  %v2824_v12 = vld [vmem:[%s3846_s2] ss:$0 sm:$0xff] }
  0x38   :  { %2972 = vmatprep.subr.bf16.mxu0 %v3301_v2  ;;  %p3274_p5 = por %p3273_p4, %p3272_p3 }
  0x3a   :  { %337 = vmatpush1.bf16.msra.mxu1 %v3149_v14  ;;  %v494_v14 = vunpack.c.0.s8 %v493_v13  ;;  %p3275_p6 = pnand %p3274_p5, %p3268_p2 }
  0x3b   :  { %338 = vmatprep.subr.bf16.mxu1 %v3150_v15  ;;  %2973 = vmatpush3.bf16.msra.mxu0 %v3163_v39  ;;  %v3308_v15 = vmov 1934713408  }
  0x3c   :  { %2974 = vmatprep.subr.bf16.mxu0 %v3301_v2 }
  0x3e   :  { %339 = vmatpush1.bf16.msra.mxu1 %v3152_v16  ;;  %v525_v16 = vunpack.c.l.s4 %v3308_v15 }
  0x3f   :  { %340 = vmatprep.subr.bf16.mxu1 %v3153_v17  ;;  %2975 = vmatpush3.bf16.msra.mxu0 %v3164_v40 }
  0x40   :  { %2976 = vmatprep.subr.bf16.mxu0 %v3301_v2  ;;  %v526_v22 = vunpack.c.0.s8 %v525_v16 }
  0x42   :  { %341 = vmatpush1.bf16.msra.mxu1 %v3155_v18  ;;  %v3425_v18 = vsub.s32 %v494_v14, %v3391_v43 }
  0x43   :  { %342 = vmatprep.subr.bf16.mxu1 %v3156_v19  ;;  %2977 = vmatpush3.bf16.msra.mxu0 %v3165_v41 }
  0x44   :  { %2978 = vmatprep.subr.bf16.mxu0 %v3301_v2 }
  0x46   :  { %343 = vmatpush1.bf16.msra.mxu1 %v3158_v20 }
  0x47   :  { %2990 = vmatprep.subr.bf16.mxu1 %v3301_v2  ;;  %2979 = vmatpush3.bf16.msra.mxu0 %v3166_v42 }
  0x48   :  { %2984 = vmatprep.subr.bf16.mxu0 %v3301_v2 }
  0x49   :  { %361 = vmatmul.mubr.bf16.vlgmr.msra.gmra.mrb[0].mxu1 %v107_v21 }
  0x4a   :  { %2992 = vmatprep.mubr.msk.bf16.mxu1 %vm3303_vm1, %v3301_v2 }
  0xb5   :  { %v3369_v25 = vpop.xlane.xlu0 %70 }
  0xb6   :  { %v74_v26 = vmul.f32 0.03125, %v3369_v25 }
  0xb8   :  { %v76_v28 = vsub.f32 %v47_v0, %v74_v26 }
  0xb9   :  { %v3375_v29 = vpop.xlane.xlu0 %72 }
  0xba   :  { %v75_v30 = vmul.f32 0.03125, %v3375_v29  ;;  %v78_v31 = vmul.f32 %v3373_v27, %v76_v28 }
  0xbc   :  { %v77_v32 = vsub.f32 %v48_v1, %v75_v30  ;;  %v80_v33 = vmul.f32 %v78_v31, %v78_v31  ;;  %v2822_v1 = vld [vmem:[%s3847_s3] ss:$0 sm:$0xff] }
  0xbe   :  { %82 = vadd.xlane.f32.xlu1 %v80_v33  ;;  %v79_v34 = vmul.f32 %v3373_v27, %v77_v32  ;;  %v3430_v32 = vsub.s32 %v526_v22, %v3391_v43 }
  0xc0   :  { %v81_v35 = vmul.f32 %v79_v34, %v79_v34 }
  0xc2   :  { %84 = vadd.xlane.f32.xlu1 %v81_v35 }
 0x11c   :  { %v362_v49 = vpop.f32.mrb[0].mxu1 }
 0x11d   :  { %v363_v50 = vadd.f32 %v362_v49, %v241_v47  ;;  %v364_v51 = vpop.f32.mrb[1].mxu1 }
 0x11e   :  { %v3401_v52 = vadd.f32 %v364_v51, %v245_v48  ;;  %v366_v53 = vpop.f32.mrb[2].mxu1 }
 0x11f   :  { %778 = vrot.lane.b32.xlu1 %v363_v50, %s3304_s17  ;;  %772 = vrot.lane.b32.xlu0 %v363_v50, %s3305_s18  ;;  %v3405_v54 = vadd.f32 %v366_v53, %v241_v47  ;;  %v368_v55 = vpop.f32.mrb[3].mxu1 }
 0x120   :  { %v3407_v56 = vadd.f32 %v368_v55, %v245_v48 }
 0x123   :  { %784 = vrot.lane.b32.xlu1 %v363_v50, %s3306_s19 }
 0x14b   :  { %v83_v57 = vpop.xlane.xlu1 %82 }
 0x14c   :  { %v86_v58 = vmul.f32 0.032258064, %v83_v57 }
 0x14e   :  { %v88_v59 = vadd.f32 1e-08, %v86_v58 }
 0x14f   :  { %v85_v60 = vpop.xlane.xlu1 %84 }
 0x150   :  { %3183 = vrsqrt.f32 %v88_v59  ;;  %v87_v61 = vmul.f32 0.032258064, %v85_v60 }
 0x152   :  { %v89_v62 = vadd.f32 1e-08, %v87_v61 }
 0x154   :  { %3185 = vrsqrt.f32 %v89_v62 }
 0x15a   :  { %v3184_v63 = vpop.eup %3183 }
 0x15b   :  { %v92_v0 = vmul.f32 %v3184_v63, %v78_v31 }
 0x15d   :  { %v98_v5 = vmul.f32 %v2822_v1, %v92_v0 }
 0x15e   :  { %v3186_v3 = vpop.eup %3185 }
 0x15f   :  { %v93_v4 = vmul.f32 %v3186_v3, %v79_v34  ;;  %v3416_v8 = vadd.f32 %v2823_v6, %v98_v5 }
 0x161   :  { %v99_v7 = vmul.f32 %v2822_v1, %v93_v4 }
 0x163   :  { %v3418_v10 = vadd.f32 %v2823_v6, %v99_v7 }
 0x165   :  { %v106_v11 = vpack.c.bf16 %v3418_v10, %v3416_v8 }
 0x167   :  { %2981 = vmatmul.mubr.bf16.vlgmr.msra.gmra.mrb[0].mxu0 %v106_v11 }
 0x168   :  { %2986 = vmatprep.mubr.msk.bf16.mxu0 %vm3303_vm1, %v3301_v2 }
 0x191   :  { %v779_v17 = vpop.permute.xlu1 %778  ;;  %v773_v21 = vpop.permute.xlu0 %772 }
 0x192   :  { %v790_v19 = vcombine.low %v363_v50, %v779_v17  ;;  %v791_v20 = vcombine.high %v363_v50, %v779_v17 }
 0x194   :  { %v798_v26 = vrot.slane %v790_v19, %v3425_v18  ;;  %v805_v28 = vrot.slane %v791_v20, %v3425_v18 }
 0x195   :  { %v785_v24 = vpop.permute.xlu1 %784 }
 0x196   :  { %v806_v30 = vcombine.low %v773_v21, %v785_v24  ;;  %v807_v31 = vcombine.high %v773_v21, %v785_v24 }
 0x198   :  { %v814_v33 = vrot.slane %v806_v30, %v3425_v18  ;;  %v821_v34 = vrot.slane %v807_v31, %v3425_v18 }
 0x19a   :  { %v822_v35 = vcombine.low %v798_v26, %v814_v33  ;;  %v823_v36 = vcombine.high %v798_v26, %v814_v33  ;;  %v838_v37 = vcombine.low %v805_v28, %v821_v34  ;;  %v839_v38 = vcombine.high %v805_v28, %v821_v34 }
 0x19c   :  { %v830_v39 = vrot.slane %v822_v35, %v3430_v32  ;;  %v837_v40 = vrot.slane %v823_v36, %v3430_v32  ;;  %v846_v41 = vrot.slane %v838_v37, %v3430_v32  ;;  %v853_v42 = vrot.slane %v839_v38, %v3430_v32 }
 0x19e   :  { %v926_v45 = vcombine.low %v830_v39, %v837_v40  ;;  %v2857_v46 = vcombine.high %v830_v39, %v837_v40  ;;  %v942_v47 = vcombine.low %v846_v41, %v853_v42  ;;  %v2858_v48 = vcombine.high %v846_v41, %v853_v42 }
 0x1a0   :  { %v933_v49 = vrot.slane %v926_v45, %v3425_v18  ;;  %v941_v50 = vrot.slane %v2857_v46, %v3425_v18  ;;  %v949_v51 = vrot.slane %v942_v47, %v3425_v18  ;;  %v957_v53 = vrot.slane %v2858_v48, %v3425_v18 }
 0x1a2   :  { %v958_v55 = vcombine.low %v933_v49, %v941_v50  ;;  %v974_v57 = vcombine.low %v949_v51, %v957_v53  ;;  %v959_v0 = vcombine.high %v933_v49, %v941_v50  ;;  %v975_v1 = vcombine.high %v949_v51, %v957_v53 }
 0x1a4   :  { %v966_v58 = vrot.slane %v958_v55, %v3430_v32  ;;  %v982_v59 = vrot.slane %v974_v57, %v3430_v32  ;;  %v973_v5 = vrot.slane %v959_v0, %v3430_v32  ;;  %v989_v6 = vrot.slane %v975_v1, %v3430_v32 }
 0x1a6   :  { %v990_v60 = vcombine.low %v966_v58, %v982_v59  ;;  %v991_v61 = vcombine.high %v966_v58, %v982_v59  ;;  %v3450_v7 = vcombine.low %v973_v5, %v989_v6  ;;  %v3452_v11 = vcombine.high %v973_v5, %v989_v6 }
 0x1a8   :  { %v1062_v62 = vpack.c.bf16 %v990_v60, %v990_v60  ;;  %v1063_v63 = vpack.c.bf16 %v991_v61, %v991_v61 }
 0x1aa   :  { %v1375_v3 = vsel %vm1370_vm2, %v1062_v62, 0  ;;  %v1421_v4 = vsel %vm1370_vm2, %v1063_v63, 0 }
 0x1ab   :  { %2985 = vmatpush3.bf16.xpose.msra.mxu0 %v1375_v3  ;;  %2991 = vmatpush3.bf16.xpose.msra.mxu1 %v1421_v4 }
 0x1ac   :  { %2996 = vmatprep.subr.bf16.mxu0 %v3301_v2  ;;  %3002 = vmatprep.subr.bf16.mxu1 %v3301_v2 }
 0x23a   :  { %v213_v13 = vpop.f32.mrb[0].mxu0 }
 0x23b   :  { %v214_v14 = vadd.f32 %v2824_v12, %v213_v13  ;;  %v2982_v15 = vpop.f32.mrb[1].mxu0 }
 0x23c   :  { %v216_v16 = vpop.f32.mrb[2].mxu0 }
 0x23d   :  { %v2983_v17 = vpop.f32.mrb[3].mxu0  ;;  %472 = vrot.lane.b32.xlu1 %v214_v14, %s3305_s18  ;;  %478 = vrot.lane.b32.xlu0 %v214_v14, %s3304_s17  ;;  %v3466_v19 = vadd.f32 %v2824_v12, %v216_v16 }
 0x241   :  { %484 = vrot.lane.b32.xlu1 %v214_v14, %s3306_s19  ;;  %774 = vrot.lane.b32.xlu0 %v3405_v54, %s3305_s18 }
 0x245   :  { %780 = vrot.lane.b32.xlu1 %v3405_v54, %s3304_s17  ;;  %786 = vrot.lane.b32.xlu0 %v3405_v54, %s3306_s19 }
 0x249   :  { %474 = vrot.lane.b32.xlu1 %v3466_v19, %s3305_s18  ;;  %480 = vrot.lane.b32.xlu0 %v3466_v19, %s3304_s17 }
 0x24d   :  { %486 = vrot.lane.b32.xlu1 %v3466_v19, %s3306_s19 }
 0x267   :  { %371 = vxpose.xlu0.b32.start.end [1/1] (short) (narrow) %v3369_v25, 8 }
 0x276   :  { %403 = vxpose.xlu1.b32.start.end [1/1] (short) (narrow) %v3375_v29, 8 }
 0x2af   :  { %v473_v20 = vpop.permute.xlu1 %472  ;;  %v479_v21 = vpop.permute.xlu0 %478 }
 0x2b0   :  { %v490_v22 = vcombine.low %v214_v14, %v479_v21  ;;  %v491_v24 = vcombine.high %v214_v14, %v479_v21 }
 0x2b2   :  { %v498_v33 = vrot.slane %v490_v22, %v3425_v18  ;;  %v505_v34 = vrot.slane %v491_v24, %v3425_v18  ;;  %v1064_v22 = vpack.c.bf16 %v3450_v7, %v3450_v7  ;;  %v1065_v24 = vpack.c.bf16 %v3452_v11, %v3452_v11 }
 0x2b3   :  { %v485_v26 = vpop.permute.xlu1 %484  ;;  %v775_v28 = vpop.permute.xlu0 %774 }
 0x2b4   :  { %v506_v30 = vcombine.low %v473_v20, %v485_v26  ;;  %v507_v31 = vcombine.high %v473_v20, %v485_v26 }
 0x2b6   :  { %v514_v35 = vrot.slane %v506_v30, %v3425_v18  ;;  %v521_v36 = vrot.slane %v507_v31, %v3425_v18 }
 0x2b7   :  { %v781_v37 = vpop.permute.xlu1 %780  ;;  %v787_v25 = vpop.permute.xlu0 %786 }
 0x2b8   :  { %v522_v38 = vcombine.low %v498_v33, %v514_v35  ;;  %v523_v29 = vcombine.high %v498_v33, %v514_v35  ;;  %v538_v39 = vcombine.low %v505_v34, %v521_v36  ;;  %v539_v40 = vcombine.high %v505_v34, %v521_v36 }
 0x2b9   :  { %v858_v41 = vcombine.low %v3405_v54, %v781_v37  ;;  %v859_v42 = vcombine.high %v3405_v54, %v781_v37  ;;  %v874_v45 = vcombine.low %v775_v28, %v787_v25  ;;  %v875_v46 = vcombine.high %v775_v28, %v787_v25 }
 0x2ba   :  { %v530_v47 = vrot.slane %v522_v38, %v3430_v32  ;;  %v537_v48 = vrot.slane %v523_v29, %v3430_v32  ;;  %v546_v49 = vrot.slane %v538_v39, %v3430_v32  ;;  %v553_v50 = vrot.slane %v539_v40, %v3430_v32 }
 0x2bb   :  { %v866_v51 = vrot.slane %v858_v41, %v3425_v18  ;;  %v873_v53 = vrot.slane %v859_v42, %v3425_v18  ;;  %v882_v55 = vrot.slane %v874_v45, %v3425_v18  ;;  %v889_v57 = vrot.slane %v875_v46, %v3425_v18  ;;  %v475_v58 = vpop.permute.xlu1 %474  ;;  %v481_v16 = vpop.permute.xlu0 %480 }
 0x2bc   :  { %v626_v54 = vcombine.low %v530_v47, %v537_v48  ;;  %v2853_v59 = vcombine.high %v530_v47, %v537_v48  ;;  %v642_v60 = vcombine.low %v546_v49, %v553_v50  ;;  %v2854_v61 = vcombine.high %v546_v49, %v553_v50 }
 0x2bd   :  { %v890_v62 = vcombine.low %v866_v51, %v882_v55  ;;  %v891_v63 = vcombine.high %v866_v51, %v882_v55  ;;  %v906_v0 = vcombine.low %v873_v53, %v889_v57  ;;  %v907_v1 = vcombine.high %v873_v53, %v889_v57 }
 0x2be   :  { %v633_v3 = vrot.slane %v626_v54, %v3425_v18  ;;  %v641_v4 = vrot.slane %v2853_v59, %v3425_v18  ;;  %v649_v5 = vrot.slane %v642_v60, %v3425_v18  ;;  %v657_v6 = vrot.slane %v2854_v61, %v3425_v18 }
 0x2bf   :  { %v898_v12 = vrot.slane %v890_v62, %v3430_v32  ;;  %v905_v13 = vrot.slane %v891_v63, %v3430_v32  ;;  %v914_v14 = vrot.slane %v906_v0, %v3430_v32  ;;  %v921_v15 = vrot.slane %v907_v1, %v3430_v32  ;;  %v487_v17 = vpop.permute.xlu1 %486 }
 0x2c0   :  { %v658_v20 = vcombine.low %v633_v3, %v641_v4  ;;  %v659_v21 = vcombine.high %v633_v3, %v641_v4  ;;  %v674_v26 = vcombine.low %v649_v5, %v657_v6  ;;  %v675_v28 = vcombine.high %v649_v5, %v657_v6 }
 0x2c1   :  { %v994_v30 = vcombine.low %v898_v12, %v905_v13  ;;  %v2859_v31 = vcombine.high %v898_v12, %v905_v13  ;;  %v558_v33 = vcombine.low %v3466_v19, %v481_v16  ;;  %v559_v34 = vcombine.high %v3466_v19, %v481_v16 }
 0x2c2   :  { %v574_v35 = vcombine.low %v475_v58, %v487_v17  ;;  %v575_v36 = vcombine.high %v475_v58, %v487_v17  ;;  %v1010_v38 = vcombine.low %v914_v14, %v921_v15  ;;  %v2860_v29 = vcombine.high %v914_v14, %v921_v15 }
 0x2c3   :  { %v1001_v37 = vrot.slane %v994_v30, %v3425_v18  ;;  %v1009_v25 = vrot.slane %v2859_v31, %v3425_v18  ;;  %v566_v7 = vrot.slane %v558_v33, %v3425_v18  ;;  %v573_v11 = vrot.slane %v559_v34, %v3425_v18 }
 0x2c4   :  { %v582_v39 = vrot.slane %v574_v35, %v3425_v18  ;;  %v589_v40 = vrot.slane %v575_v36, %v3425_v18  ;;  %v666_v41 = vrot.slane %v658_v20, %v3430_v32  ;;  %v682_v19 = vrot.slane %v674_v26, %v3430_v32 }
 0x2c5   :  { %v673_v42 = vrot.slane %v659_v21, %v3430_v32  ;;  %v689_v45 = vrot.slane %v675_v28, %v3430_v32  ;;  %v1017_v50 = vrot.slane %v1010_v38, %v3425_v18  ;;  %v1025_v51 = vrot.slane %v2860_v29, %v3425_v18 }
 0x2c6   :  { %v590_v46 = vcombine.low %v566_v7, %v582_v39  ;;  %v591_v47 = vcombine.high %v566_v7, %v582_v39  ;;  %v606_v48 = vcombine.low %v573_v11, %v589_v40  ;;  %v607_v49 = vcombine.high %v573_v11, %v589_v40 }
 0x2c7   :  { %v690_v53 = vcombine.low %v666_v41, %v682_v19  ;;  %v691_v55 = vcombine.high %v666_v41, %v682_v19  ;;  %v1467_v62 = vsel %vm1370_vm2, %v1064_v22, 0  ;;  %v692_v63 = vcombine.low %v673_v42, %v689_v45 }
 0x2c8   :  { %v598_v57 = vrot.slane %v590_v46, %v3430_v32  ;;  %v605_v58 = vrot.slane %v591_v47, %v3430_v32  ;;  %v614_v54 = vrot.slane %v606_v48, %v3430_v32  ;;  %v621_v59 = vrot.slane %v607_v49, %v3430_v32 }
 0x2c9   :  { %v762_v60 = vpack.c.bf16 %v690_v53, %v690_v53  ;;  %v763_v61 = vpack.c.bf16 %v691_v55, %v691_v55  ;;  %v1513_v5 = vsel %vm1370_vm2, %v1065_v24, 0  ;;  %v1026_v6 = vcombine.low %v1001_v37, %v1009_v25 }
 0x2ca   :  { %v694_v0 = vcombine.low %v598_v57, %v605_v58  ;;  %v2855_v1 = vcombine.high %v598_v57, %v605_v58  ;;  %v710_v3 = vcombine.low %v614_v54, %v621_v59  ;;  %v2856_v4 = vcombine.high %v614_v54, %v621_v59 }
 0x2cb   :  { %2987 = vmatmul.mubr.msk.bf16.vlgmr.msra.gmra.mrb[4].mxu0 %vm1370_vm2, %v762_v60  ;;  %2993 = vmatmul.mubr.msk.bf16.vlgmr.msra.gmra.mrb[4].mxu1 %vm1370_vm2, %v763_v61  ;;  %v1042_v12 = vcombine.low %v1017_v50, %v1025_v51  ;;  %v1027_v13 = vcombine.high %v1001_v37, %v1009_v25  ;;  %v1034_v20 = vrot.slane %v1026_v6, %v3430_v32 }
 0x2cc   :  { %v701_v14 = vrot.slane %v694_v0, %v3425_v18  ;;  %v709_v15 = vrot.slane %v2855_v1, %v3425_v18  ;;  %v717_v16 = vrot.slane %v710_v3, %v3425_v18  ;;  %v725_v17 = vrot.slane %v2856_v4, %v3425_v18  ;;  %2997 = vmatpush3.bf16.xpose.msra.mxu0 %v1467_v62 }
 0x2cd   :  { %3003 = vmatpush3.bf16.xpose.msra.mxu1 %v1513_v5  ;;  %2998 = vmatprep.mubr.msk.bf16.mxu0 %vm3303_vm1, %v3301_v2  ;;  %v1050_v21 = vrot.slane %v1042_v12, %v3430_v32  ;;  %v693_v26 = vcombine.high %v673_v42, %v689_v45  ;;  %v1041_v28 = vrot.slane %v1027_v13, %v3430_v32 }
 0x2ce   :  { %v726_v22 = vcombine.low %v701_v14, %v709_v15  ;;  %v742_v24 = vcombine.low %v717_v16, %v725_v17  ;;  %3004 = vmatprep.mubr.msk.bf16.mxu1 %vm3303_vm1, %v3301_v2  ;;  %3008 = vmatprep.subr.bf16.mxu0 %v3301_v2  ;;  %v1043_v33 = vcombine.high %v1017_v50, %v1025_v51 }
 0x2cf   :  { %3014 = vmatprep.subr.bf16.mxu1 %v3301_v2  ;;  %v1058_v30 = vcombine.low %v1034_v20, %v1050_v21  ;;  %v1059_v31 = vcombine.high %v1034_v20, %v1050_v21  ;;  %v764_v34 = vpack.c.bf16 %v692_v63, %v692_v63  ;;  %v765_v29 = vpack.c.bf16 %v693_v26, %v693_v26 }
 0x2d0   :  { %v734_v35 = vrot.slane %v726_v22, %v3430_v32  ;;  %v750_v25 = vrot.slane %v742_v24, %v3430_v32  ;;  %v1057_v38 = vrot.slane %v1043_v33, %v3430_v32  ;;  %v727_v41 = vcombine.high %v701_v14, %v709_v15 }
 0x2d1   :  { %v1066_v36 = vpack.c.bf16 %v1058_v30, %v1058_v30  ;;  %v1067_v37 = vpack.c.bf16 %v1059_v31, %v1059_v31  ;;  %v743_v19 = vcombine.high %v717_v16, %v725_v17 }
 0x2d2   :  { %v1060_v11 = vcombine.low %v1041_v28, %v1057_v38  ;;  %v1061_v40 = vcombine.high %v1041_v28, %v1057_v38  ;;  %v758_v42 = vcombine.low %v734_v35, %v750_v25  ;;  %v759_v45 = vcombine.high %v734_v35, %v750_v25 }
 0x2d3   :  { %2999 = vmatmul.mubr.msk.bf16.vlgmr.msra.gmra.mrb[8].mxu0 %vm1370_vm2, %v764_v34  ;;  %v1559_v7 = vsel %vm1370_vm2, %v1066_v36, 0  ;;  %v1605_v39 = vsel %vm1370_vm2, %v1067_v37, 0  ;;  %v741_v49 = vrot.slane %v727_v41, %v3430_v32  ;;  %v757_v50 = vrot.slane %v743_v19, %v3430_v32 }
 0x2d4   :  { %3005 = vmatmul.mubr.msk.bf16.vlgmr.msra.gmra.mrb[8].mxu1 %vm1370_vm2, %v765_v29  ;;  %3009 = vmatpush3.bf16.xpose.msra.mxu0 %v1559_v7  ;;  %v1068_v46 = vpack.c.bf16 %v1060_v11, %v1060_v11  ;;  %v1069_v47 = vpack.c.bf16 %v1061_v40, %v1061_v40  ;;  %v766_v48 = vpack.c.bf16 %v758_v42, %v758_v42 }
 0x2d5   :  { %3015 = vmatpush3.bf16.xpose.msra.mxu1 %v1605_v39  ;;  %3010 = vmatprep.mubr.msk.bf16.mxu0 %vm3303_vm1, %v3301_v2  ;;  %v767_v51 = vpack.c.bf16 %v759_v45, %v759_v45  ;;  %v760_v57 = vcombine.low %v741_v49, %v757_v50  ;;  %v761_v58 = vcombine.high %v741_v49, %v757_v50 }
 0x2d6   :  { %3016 = vmatprep.mubr.msk.bf16.mxu1 %vm3303_vm1, %v3301_v2  ;;  %3020 = vmatprep.subr.bf16.mxu0 %v3301_v2  ;;  %v1651_v53 = vsel %vm1370_vm2, %v1068_v46, 0  ;;  %v1697_v55 = vsel %vm1370_vm2, %v1069_v47, 0 }
 0x2d7   :  { %3026 = vmatprep.subr.bf16.mxu1 %v3301_v2  ;;  %v768_v54 = vpack.c.bf16 %v760_v57, %v760_v57  ;;  %v769_v59 = vpack.c.bf16 %v761_v58, %v761_v58 }
 0x2db   :  { %3011 = vmatmul.mubr.msk.bf16.vlgmr.msra.gmra.mrb[12].mxu0 %vm1370_vm2, %v766_v48 }
 0x2dc   :  { %3017 = vmatmul.mubr.msk.bf16.vlgmr.msra.gmra.mrb[12].mxu1 %vm1370_vm2, %v767_v51  ;;  %3021 = vmatpush3.bf16.xpose.msra.mxu0 %v1651_v53 }
 0x2dd   :  { %3027 = vmatpush3.bf16.xpose.msra.mxu1 %v1697_v55  ;;  %3022 = vmatprep.mubr.msk.bf16.mxu0 %vm3303_vm1, %v3301_v2 }
 0x2de   :  { %3028 = vmatprep.mubr.msk.bf16.mxu1 %vm3303_vm1, %v3301_v2  ;;  %3032 = vmatprep.subr.bf16.mxu0 %v3301_v2 }
 0x2df   :  { %3038 = vmatprep.subr.bf16.mxu1 %v3301_v2 }
 0x2e3   :  { %3023 = vmatmul.mubr.msk.bf16.vlgmr.msra.gmra.mrb[16].mxu0 %vm1370_vm2, %v768_v54 }
 0x2e4   :  { %3029 = vmatmul.mubr.msk.bf16.vlgmr.msra.gmra.mrb[16].mxu1 %vm1370_vm2, %v769_v59  ;;  %3034 = vmatprep.mubr.msk.bf16.mxu0 %vm3303_vm1, %v3301_v2 }
 0x2e5   :  { %3040 = vmatprep.mubr.msk.bf16.mxu1 %vm3303_vm1, %v3301_v2 }
 0x2e7   :  { %v387_v47 = vpop.trf.xlu0 }
 0x2e8   :  { %vm435_vm4 = vcmp.ne.f32.partialorder %v387_v47, 0.0 }
 0x2e9   :  { %v440_v53 = vsel %vm435_vm4, 1, %v3302_v9 }
 0x2ea   :  { %v445_v58 = vrot.slane %v440_v53, %v3394_v44 }
 0x2ec   :  { %vm450_vm6 = vcmp.eq.s32.totalorder %v445_v58, 1 }
 0x2ed   :  { %vm454_vm7 = vmand %vm450_vm6, %vm439_vm5 }
 0x2f6   :  { %v419_v46 = vpop.trf.xlu1 }
 0x2f7   :  { %vm436_vm8 = vcmp.ne.f32.partialorder %v419_v46, 0.0 }
 0x39e   :  { %v1411_v60 = vpop.f32.mrb[4].mxu0  ;;  %v1457_v61 = vpop.f32.mrb[4].mxu1 }
 0x39f   :  { %v2988_v62 = vpop.f32.mrb[5].mxu0  ;;  %v2994_v63 = vpop.f32.mrb[5].mxu1  ;;  %v1743_v0 = vsel %vm1739_vm3, %v1457_v61, -inf  ;;  %v1740_v1 = vsel %vm1739_vm3, %v1411_v60, -inf }
 0x3a0   :  { %1744 = vmax.xlane.f32.xlu1 %v1743_v0  ;;  %v1460_v3 = vpop.f32.mrb[6].mxu1  ;;  %1741 = vmax.xlane.f32.xlu0 %v1740_v1  ;;  %v1414_v4 = vpop.f32.mrb[6].mxu0  ;;  %v2849_v0 = vsel %vm454_vm7, 1.0, %v3301_v2 }
 0x3a1   :  { %v2989_v5 = vpop.f32.mrb[7].mxu0  ;;  %v2995_v6 = vpop.f32.mrb[7].mxu1 }
 0x3a6   :  { %v1503_v12 = vpop.f32.mrb[8].mxu0 }
 0x3a7   :  { %v3570_v13 = vpop.f32.mrb[8].mxu1  ;;  %v3000_v14 = vpop.f32.mrb[9].mxu0  ;;  %v1746_v15 = vsel %vm1739_vm3, %v1503_v12, -inf }
 0x3a8   :  { %v3006_v16 = vpop.f32.mrb[9].mxu1  ;;  %1747 = vmax.xlane.f32.xlu0 %v1746_v15  ;;  %v1506_v17 = vpop.f32.mrb[10].mxu0  ;;  %v1749_v24 = vsel %vm1739_vm3, %v3570_v13, -inf  ;;  %v441_v15 = vsel %vm436_vm8, 1, %v3302_v9 }
 0x3a9   :  { %v1552_v20 = vpop.f32.mrb[10].mxu1  ;;  %v3001_v21 = vpop.f32.mrb[11].mxu0 }
 0x3aa   :  { %v3007_v22 = vpop.f32.mrb[11].mxu1 }
 0x3ab   :  { %v449_v22 = vrot.slane %v441_v15, %v3394_v44 }
 0x3ac   :  { %1750 = vmax.xlane.f32.xlu0 %v1749_v24 }
 0x3ad   :  { %vm451_vm9 = vcmp.eq.s32.totalorder %v449_v22, 1 }
 0x3ae   :  { %v3575_v26 = vpop.f32.mrb[12].mxu0  ;;  %vm455_vm10 = vmand %vm451_vm9, %vm439_vm5 }
 0x3af   :  { %v3577_v28 = vpop.f32.mrb[12].mxu1  ;;  %v3012_v30 = vpop.f32.mrb[13].mxu0  ;;  %v1752_v31 = vsel %vm1739_vm3, %v3575_v26, -inf }
 0x3b0   :  { %v3018_v33 = vpop.f32.mrb[13].mxu1  ;;  %v1755_v34 = vsel %vm1739_vm3, %v3577_v28, -inf  ;;  %1753 = vmax.xlane.f32.xlu0 %v1752_v31  ;;  %v1598_v35 = vpop.f32.mrb[14].mxu0 }
 0x3b1   :  { %1756 = vmax.xlane.f32.xlu1 %v1755_v34  ;;  %v1644_v36 = vpop.f32.mrb[14].mxu1  ;;  %v3013_v37 = vpop.f32.mrb[15].mxu0 }
 0x3b2   :  { %v3019_v25 = vpop.f32.mrb[15].mxu1  ;;  %v2850_v36 = vsel %vm455_vm10, 1.0, %v3301_v2 }
 0x3b6   :  { %v3583_v38 = vpop.f32.mrb[16].mxu0 }
 0x3b7   :  { %v3585_v29 = vpop.f32.mrb[16].mxu1  ;;  %v3024_v7 = vpop.f32.mrb[17].mxu0  ;;  %v1758_v11 = vsel %vm1739_vm3, %v3583_v38, -inf }
 0x3b8   :  { %v3030_v39 = vpop.f32.mrb[17].mxu1  ;;  %1759 = vmax.xlane.f32.xlu0 %v1758_v11  ;;  %v1690_v40 = vpop.f32.mrb[18].mxu0  ;;  %v1761_v45 = vsel %vm1739_vm3, %v3585_v29, -inf }
 0x3b9   :  { %v1736_v41 = vpop.f32.mrb[18].mxu1  ;;  %v3025_v19 = vpop.f32.mrb[19].mxu0 }
 0x3ba   :  { %v3031_v42 = vpop.f32.mrb[19].mxu1 }
 0x3c2   :  { %1078 = vrot.lane.b32.xlu1 %v3401_v52, %s3304_s17 }
 0x3ce   :  { %1072 = vrot.lane.b32.xlu0 %v3401_v52, %s3305_s18 }
 0x3e6   :  { %1762 = vmax.xlane.f32.xlu1 %v1761_v45 }
 0x3f7   :  { %1084 = vrot.lane.b32.xlu1 %v3401_v52, %s3306_s19 }
 0x41b   :  { %460 = vadd.xlane.f32.xlu1 %v3416_v8 }
 0x42d   :  { %v1745_v48 = vpop.xlane.xlu1 %1744  ;;  %v1742_v49 = vpop.xlane.xlu0 %1741 }
 0x42e   :  { %v1765_v50 = vsub.f32 %v1457_v61, %v1745_v48  ;;  %v1764_v51 = vsub.f32 %v1411_v60, %v1742_v49 }
 0x430   :  { %v1774_v55 = vmul.f32 1.442695, %v1765_v50  ;;  %v1772_v57 = vmul.f32 1.442695, %v1764_v51 }
 0x432   :  { %3187 = vpow2.f32 %v1774_v55 }
 0x433   :  { %3189 = vpow2.f32 %v1772_v57 }
 0x435   :  { %v1748_v54 = vpop.xlane.xlu0 %1747 }
 0x436   :  { %v1766_v59 = vsub.f32 %v1503_v12, %v1748_v54 }
 0x438   :  { %v1776_v62 = vmul.f32 1.442695, %v1766_v59 }
 0x439   :  { %v1751_v60 = vpop.xlane.xlu0 %1750 }
 0x43a   :  { %3191 = vpow2.f32 %v1776_v62  ;;  %v1767_v61 = vsub.f32 %v3570_v13, %v1751_v60 }
 0x43c   :  { %v3188_v63 = vpop.eup %3187  ;;  %v1778_v1 = vmul.f32 1.442695, %v1767_v61 }
 0x43d   :  { %v3190_v3 = vpop.eup %3189  ;;  %v1754_v4 = vpop.xlane.xlu0 %1753  ;;  %v3607_v5 = vmul.f32 %v3188_v63, %v2849_v0 }
 0x43e   :  { %3193 = vpow2.f32 %v1778_v1  ;;  %v1757_v6 = vpop.xlane.xlu1 %1756  ;;  %v1768_v12 = vsub.f32 %v3575_v26, %v1754_v4  ;;  %v3610_v14 = vmul.f32 %v3190_v3, %v2849_v0 }
 0x43f   :  { %v1769_v16 = vsub.f32 %v3577_v28, %v1757_v6  ;;  %v1799_v13 = vsel %vm1739_vm3, %v3607_v5, 0.0 }
 0x440   :  { %v1780_v17 = vmul.f32 1.442695, %v1768_v12  ;;  %1800 = vadd.xlane.f32.xlu1 %v1799_v13  ;;  %v1796_v20 = vsel %vm1739_vm3, %v3610_v14, 0.0 }
 0x441   :  { %v1782_v21 = vmul.f32 1.442695, %v1769_v16  ;;  %1797 = vadd.xlane.f32.xlu0 %v1796_v20 }
 0x442   :  { %3195 = vpow2.f32 %v1780_v17  ;;  %v1079_v40 = vpop.permute.xlu1 %1078 }
 0x443   :  { %3197 = vpow2.f32 %v1782_v21  ;;  %v1090_v42 = vcombine.low %v3401_v52, %v1079_v40  ;;  %v1091_v45 = vcombine.high %v3401_v52, %v1079_v40 }
 0x444   :  { %v3192_v24 = vpop.eup %3191 }
 0x445   :  { %v1760_v26 = vpop.xlane.xlu0 %1759  ;;  %v3619_v30 = vmul.f32 %v3192_v24, %v2849_v0  ;;  %v1098_v51 = vrot.slane %v1090_v42, %v3425_v18  ;;  %v1105_v53 = vrot.slane %v1091_v45, %v3425_v18 }
 0x446   :  { %v1770_v9 = vsub.f32 %v3583_v38, %v1760_v26 }
 0x447   :  { %v1802_v28 = vsel %vm1739_vm3, %v3619_v30, 0.0 }
 0x448   :  { %v3194_v31 = vpop.eup %3193  ;;  %v1784_v33 = vmul.f32 1.442695, %v1770_v9  ;;  %1803 = vadd.xlane.f32.xlu0 %v1802_v28 }
 0x449   :  { %v3627_v44 = vmul.f32 %v3194_v31, %v2849_v0  ;;  %v1073_v47 = vpop.permute.xlu0 %1072 }
 0x44a   :  { %3199 = vpow2.f32 %v1784_v33 }
 0x44b   :  { %v1805_v34 = vsel %vm1739_vm3, %v3627_v44, 0.0 }
 0x44c   :  { %v3196_v35 = vpop.eup %3195  ;;  %1806 = vadd.xlane.f32.xlu1 %v1805_v34 }
 0x44d   :  { %v3198_v37 = vpop.eup %3197  ;;  %v3632_v25 = vmul.f32 %v3196_v35, %v2850_v36 }
 0x44e   :  { %v3636_v7 = vmul.f32 %v3198_v37, %v2850_v36 }
 0x44f   :  { %v1808_v38 = vsel %vm1739_vm3, %v3632_v25, 0.0 }
 0x450   :  { %1809 = vadd.xlane.f32.xlu0 %v1808_v38  ;;  %v1811_v23 = vsel %vm1739_vm3, %v3636_v7, 0.0 }
 0x454   :  { %v3200_v43 = vpop.eup %3199  ;;  %1812 = vadd.xlane.f32.xlu0 %v1811_v23 }
 0x455   :  { %v3640_v11 = vmul.f32 %v3200_v43, %v2850_v36 }
 0x457   :  { %v1814_v39 = vsel %vm1739_vm3, %v3640_v11, 0.0 }
 0x458   :  { %1815 = vadd.xlane.f32.xlu0 %v1814_v39 }
 0x45d   :  { %1080 = vrot.lane.b32.xlu1 %v3407_v56, %s3304_s17 }
 0x461   :  { %1086 = vrot.lane.b32.xlu1 %v3407_v56, %s3306_s19 }
 0x46e   :  { %1074 = vrot.lane.b32.xlu0 %v3407_v56, %s3305_s18 }
 0x473   :  { %v1763_v41 = vpop.xlane.xlu1 %1762 }
 0x474   :  { %v1771_v19 = vsub.f32 %v3585_v29, %v1763_v41 }
 0x476   :  { %v1786_v46 = vmul.f32 1.442695, %v1771_v19 }
 0x477   :  { %v1085_v48 = vpop.permute.xlu1 %1084 }
 0x478   :  { %3201 = vpow2.f32 %v1786_v46  ;;  %v1106_v49 = vcombine.low %v1073_v47, %v1085_v48  ;;  %v1107_v50 = vcombine.high %v1073_v47, %v1085_v48 }
 0x47a   :  { %v1114_v55 = vrot.slane %v1106_v49, %v3425_v18  ;;  %v1121_v57 = vrot.slane %v1107_v50, %v3425_v18 }
 0x47c   :  { %v1122_v58 = vcombine.low %v1098_v51, %v1114_v55  ;;  %v1123_v29 = vcombine.high %v1098_v51, %v1114_v55  ;;  %v1138_v54 = vcombine.low %v1105_v53, %v1121_v57  ;;  %v1139_v59 = vcombine.high %v1105_v53, %v1121_v57 }
 0x47e   :  { %v1130_v52 = vrot.slane %v1122_v58, %v3430_v32  ;;  %v1137_v62 = vrot.slane %v1123_v29, %v3430_v32  ;;  %v1146_v60 = vrot.slane %v1138_v54, %v3430_v32  ;;  %v1153_v61 = vrot.slane %v1139_v59, %v3430_v32 }
 0x480   :  { %v1226_v63 = vcombine.low %v1130_v52, %v1137_v62  ;;  %v2861_v0 = vcombine.high %v1130_v52, %v1137_v62  ;;  %v1242_v1 = vcombine.low %v1146_v60, %v1153_v61  ;;  %v2862_v3 = vcombine.high %v1146_v60, %v1153_v61 }
 0x482   :  { %v3202_v4 = vpop.eup %3201  ;;  %v1233_v6 = vrot.slane %v1226_v63, %v3425_v18  ;;  %v1241_v12 = vrot.slane %v2861_v0, %v3425_v18  ;;  %v1249_v15 = vrot.slane %v1242_v1, %v3425_v18  ;;  %v1257_v16 = vrot.slane %v2862_v3, %v3425_v18 }
 0x483   :  { %v3665_v13 = vmul.f32 %v3202_v4, %v2850_v36 }
 0x484   :  { %v1258_v17 = vcombine.low %v1233_v6, %v1241_v12  ;;  %v1274_v20 = vcombine.low %v1249_v15, %v1257_v16  ;;  %v1259_v21 = vcombine.high %v1233_v6, %v1241_v12  ;;  %v1275_v22 = vcombine.high %v1249_v15, %v1257_v16 }
 0x485   :  { %v1817_v24 = vsel %vm1739_vm3, %v3665_v13, 0.0 }
 0x486   :  { %1818 = vadd.xlane.f32.xlu1 %v1817_v24  ;;  %v1266_v26 = vrot.slane %v1258_v17, %v3430_v32  ;;  %v1282_v9 = vrot.slane %v1274_v20, %v3430_v32  ;;  %v1273_v28 = vrot.slane %v1259_v21, %v3430_v32  ;;  %v1289_v31 = vrot.slane %v1275_v22, %v3430_v32 }
 0x488   :  { %v1290_v33 = vcombine.low %v1266_v26, %v1282_v9  ;;  %v1291_v34 = vcombine.high %v1266_v26, %v1282_v9  ;;  %v1292_v35 = vcombine.low %v1273_v28, %v1289_v31  ;;  %v1293_v36 = vcombine.high %v1273_v28, %v1289_v31 }
 0x48a   :  { %462 = vadd.xlane.f32.xlu1 %v3418_v10  ;;  %v1362_v37 = vpack.c.bf16 %v1290_v33, %v1290_v33  ;;  %v1363_v38 = vpack.c.bf16 %v1291_v34, %v1291_v34  ;;  %v1365_v29 = vpack.c.bf16 %v1293_v36, %v1293_v36  ;;  %v1364_v59 = vpack.c.bf16 %v1292_v35, %v1292_v35 }
 0x48c   :  { %v1865_v23 = vsel %vm1863_vm11, %v1362_v37, 0  ;;  %v1911_v43 = vsel %vm1863_vm11, %v1363_v38, 0  ;;  %v2003_v60 = vsel %vm1863_vm11, %v1365_v29, 0  ;;  %v1957_v0 = vsel %vm1863_vm11, %v1364_v59, 0 }
 0x48d   :  { %3033 = vmatpush3.bf16.msra.mxu0 %v1865_v23  ;;  %3039 = vmatpush3.bf16.msra.mxu1 %v1911_v43 }
 0x48e   :  { %3044 = vmatprep.subr.bf16.mxu0 %v3301_v2  ;;  %3050 = vmatprep.subr.bf16.mxu1 %v3301_v2 }
 0x4a8   :  { %v461_v39 = vpop.xlane.xlu1 %460 }
 0x4a9   :  { %vm464_vm12 = vcmp.ne.f32.partialorder %v461_v39, 0.0 }
 0x4aa   :  { %v2851_v49 = vsel %vm464_vm12, 1.0, %v3301_v2 }
 0x4cd   :  { %v1801_v40 = vpop.xlane.xlu1 %1800 }
 0x4ce   :  { %v1821_v41 = vadd.f32 1e-30, %v1801_v40  ;;  %v1798_v19 = vpop.xlane.xlu0 %1797 }
 0x4cf   :  { %v1820_v42 = vadd.f32 1e-30, %v1798_v19 }
 0x4d0   :  { %3203 = vrcp.f32 %v1821_v41 }
 0x4d1   :  { %3205 = vrcp.f32 %v1820_v42 }
 0x4d5   :  { %v1804_v45 = vpop.xlane.xlu0 %1803 }
 0x4d6   :  { %v1822_v46 = vadd.f32 1e-30, %v1804_v45 }
 0x4d8   :  { %3207 = vrcp.f32 %v1822_v46 }
 0x4d9   :  { %v1807_v47 = vpop.xlane.xlu1 %1806 }
 0x4da   :  { %v3204_v48 = vpop.eup %3203  ;;  %v1823_v50 = vadd.f32 1e-30, %v1807_v47 }
 0x4db   :  { %v3206_v51 = vpop.eup %3205  ;;  %v1837_v53 = vmul.f32 %v3204_v48, %v2851_v49 }
 0x4dc   :  { %v1836_v55 = vmul.f32 %v3206_v51, %v2851_v49  ;;  %3209 = vrcp.f32 %v1823_v50 }
 0x4dd   :  { %v3679_v57 = vpop.xlane.xlu0 %1809  ;;  %v1845_v58 = vmul.f32 %v1837_v53, %v3607_v5  ;;  %v1081_v5 = vpop.permute.xlu1 %1080 }
 0x4de   :  { %v1844_v54 = vmul.f32 %v1836_v55, %v3610_v14  ;;  %v1158_v15 = vcombine.low %v3407_v56, %v1081_v5  ;;  %v1159_v16 = vcombine.high %v3407_v56, %v1081_v5 }
 0x4df   :  { %v1853_v52 = vpack.c.bf16 %v1845_v58, %v1845_v58 }
 0x4e0   :  { %v1852_v62 = vpack.c.bf16 %v1844_v54, %v1844_v54  ;;  %v1173_v9 = vrot.slane %v1159_v16, %v3425_v18  ;;  %v1824_v54 = vadd.f32 1e-30, %v3679_v57 }
 0x4e1   :  { %3041 = vmatmul.mubr.msk.bf16.vlgmr.msra.gmra.mrb[20].mxu1 %vm1739_vm3, %v1853_v52  ;;  %v3685_v61 = vpop.xlane.xlu0 %1812  ;;  %v1087_v17 = vpop.permute.xlu1 %1086 }
 0x4e2   :  { %v3208_v63 = vpop.eup %3207  ;;  %3035 = vmatmul.mubr.msk.bf16.vlgmr.msra.gmra.mrb[20].mxu0 %vm1739_vm3, %v1852_v62  ;;  %3051 = vmatpush3.bf16.msra.mxu1 %v2003_v60  ;;  %v1825_v59 = vadd.f32 1e-30, %v3685_v61  ;;  %3211 = vrcp.f32 %v1824_v54 }
 0x4e3   :  { %v1838_v1 = vmul.f32 %v3208_v63, %v2851_v49  ;;  %3045 = vmatpush3.bf16.msra.mxu0 %v1957_v0  ;;  %3046 = vmatprep.mubr.msk.bf16.mxu0 %vm3303_vm1, %v3301_v2 }
 0x4e4   :  { %3052 = vmatprep.mubr.msk.bf16.mxu1 %vm3303_vm1, %v3301_v2  ;;  %3056 = vmatprep.subr.bf16.mxu0 %v3301_v2  ;;  %3213 = vrcp.f32 %v1825_v59 }
 0x4e5   :  { %v1816_v14 = vpop.xlane.xlu0 %1815  ;;  %v1846_v3 = vmul.f32 %v1838_v1, %v3619_v30  ;;  %3062 = vmatprep.subr.bf16.mxu1 %v3301_v2  ;;  %v1166_v30 = vrot.slane %v1158_v15, %v3425_v18 }
 0x4e6   :  { %v3210_v4 = vpop.eup %3209  ;;  %v1826_v52 = vadd.f32 1e-30, %v1816_v14 }
 0x4e7   :  { %v1839_v6 = vmul.f32 %v3210_v4, %v2851_v49  ;;  %v1854_v12 = vpack.c.bf16 %v1846_v3, %v1846_v3 }
 0x4e8   :  { %3215 = vrcp.f32 %v1826_v52 }
 0x4e9   :  { %v1075_v20 = vpop.permute.xlu0 %1074  ;;  %v1847_v21 = vmul.f32 %v1839_v6, %v3627_v44 }
 0x4ea   :  { %3047 = vmatmul.mubr.msk.bf16.vlgmr.msra.gmra.mrb[24].mxu0 %vm1739_vm3, %v1854_v12  ;;  %v1174_v22 = vcombine.low %v1075_v20, %v1087_v17  ;;  %v1175_v24 = vcombine.high %v1075_v20, %v1087_v17 }
 0x4eb   :  { %v1855_v26 = vpack.c.bf16 %v1847_v21, %v1847_v21  ;;  %3058 = vmatprep.mubr.msk.bf16.mxu0 %vm3303_vm1, %v3301_v2 }
 0x4ec   :  { %v1182_v28 = vrot.slane %v1174_v22, %v3425_v18  ;;  %v1189_v56 = vrot.slane %v1175_v24, %v3425_v18  ;;  %v3212_v4 = vpop.eup %3211 }
 0x4ed   :  { %3053 = vmatmul.mubr.msk.bf16.vlgmr.msra.gmra.mrb[24].mxu1 %vm1739_vm3, %v1855_v26 }
 0x4ee   :  { %v1190_v31 = vcombine.low %v1166_v30, %v1182_v28  ;;  %v1191_v44 = vcombine.high %v1166_v30, %v1182_v28  ;;  %v1206_v33 = vcombine.low %v1173_v9, %v1189_v56  ;;  %v1207_v34 = vcombine.high %v1173_v9, %v1189_v56  ;;  %3064 = vmatprep.mubr.msk.bf16.mxu1 %vm3303_vm1, %v3301_v2  ;;  %v3214_v12 = vpop.eup %3213 }
 0x4f0   :  { %v1198_v35 = vrot.slane %v1190_v31, %v3430_v32  ;;  %v1205_v36 = vrot.slane %v1191_v44, %v3430_v32  ;;  %v1214_v37 = vrot.slane %v1206_v33, %v3430_v32  ;;  %v1221_v38 = vrot.slane %v1207_v34, %v3430_v32 }
 0x4f2   :  { %v1294_v23 = vcombine.low %v1198_v35, %v1205_v36  ;;  %v2863_v43 = vcombine.high %v1198_v35, %v1205_v36  ;;  %v1310_v39 = vcombine.low %v1214_v37, %v1221_v38  ;;  %v2864_v40 = vcombine.high %v1214_v37, %v1221_v38  ;;  %v3216_v22 = vpop.eup %3215 }
 0x4f4   :  { %v1301_v41 = vrot.slane %v1294_v23, %v3425_v18  ;;  %v1309_v19 = vrot.slane %v2863_v43, %v3425_v18  ;;  %v1317_v42 = vrot.slane %v1310_v39, %v3425_v18  ;;  %v1325_v45 = vrot.slane %v2864_v40, %v3425_v18 }
 0x4f6   :  { %v1326_v46 = vcombine.low %v1301_v41, %v1309_v19  ;;  %v1342_v47 = vcombine.low %v1317_v42, %v1325_v45  ;;  %v1327_v62 = vcombine.high %v1301_v41, %v1309_v19  ;;  %v1343_v60 = vcombine.high %v1317_v42, %v1325_v45 }
 0x4f8   :  { %v1334_v48 = vrot.slane %v1326_v46, %v3430_v32  ;;  %v1350_v49 = vrot.slane %v1342_v47, %v3430_v32  ;;  %v1341_v1 = vrot.slane %v1327_v62, %v3430_v32  ;;  %v1357_v5 = vrot.slane %v1343_v60, %v3430_v32 }
 0x4fa   :  { %v1358_v50 = vcombine.low %v1334_v48, %v1350_v49  ;;  %v1359_v51 = vcombine.high %v1334_v48, %v1350_v49  ;;  %v1360_v6 = vcombine.low %v1341_v1, %v1357_v5  ;;  %v1361_v57 = vcombine.high %v1341_v1, %v1357_v5 }
 0x4fc   :  { %v1366_v53 = vpack.c.bf16 %v1358_v50, %v1358_v50  ;;  %v1367_v55 = vpack.c.bf16 %v1359_v51, %v1359_v51  ;;  %v1368_v20 = vpack.c.bf16 %v1360_v6, %v1360_v6  ;;  %v1369_v21 = vpack.c.bf16 %v1361_v57, %v1361_v57 }
 0x4fe   :  { %v2049_v58 = vsel %vm1863_vm11, %v1366_v53, 0  ;;  %v2095_v29 = vsel %vm1863_vm11, %v1367_v55, 0  ;;  %v2141_v28 = vsel %vm1863_vm11, %v1368_v20, 0  ;;  %v2187_v56 = vsel %vm1863_vm11, %v1369_v21, 0 }
 0x4ff   :  { %3057 = vmatpush3.bf16.msra.mxu0 %v2049_v58  ;;  %3063 = vmatpush3.bf16.msra.mxu1 %v2095_v29 }
 0x500   :  { %3068 = vmatprep.subr.bf16.mxu0 %v3301_v2  ;;  %3074 = vmatprep.subr.bf16.mxu1 %v3301_v2 }
 0x513   :  { %v1819_v63 = vpop.xlane.xlu1 %1818 }
 0x514   :  { %v1827_v0 = vadd.f32 1e-30, %v1819_v63 }
 0x516   :  { %3217 = vrcp.f32 %v1827_v0 }
 0x517   :  { %v463_v3 = vpop.xlane.xlu1 %462 }
 0x518   :  { %vm465_vm13 = vcmp.ne.f32.partialorder %v463_v3, 0.0 }
 0x519   :  { %v2852_v61 = vsel %vm465_vm13, 1.0, %v3301_v2 }
 0x51a   :  { %v1840_v15 = vmul.f32 %v3212_v4, %v2852_v61  ;;  %v1841_v14 = vmul.f32 %v3214_v12, %v2852_v61  ;;  %v1842_v24 = vmul.f32 %v3216_v22, %v2852_v61 }
 0x51c   :  { %v1848_v16 = vmul.f32 %v1840_v15, %v3632_v25  ;;  %v1849_v17 = vmul.f32 %v1841_v14, %v3636_v7  ;;  %v1850_v25 = vmul.f32 %v1842_v24, %v3640_v11 }
 0x51e   :  { %v1856_v26 = vpack.c.bf16 %v1848_v16, %v1848_v16  ;;  %v1857_v30 = vpack.c.bf16 %v1849_v17, %v1849_v17  ;;  %v1858_v33 = vpack.c.bf16 %v1850_v25, %v1850_v25 }
 0x520   :  { %v3218_v9 = vpop.eup %3217  ;;  %3059 = vmatmul.mubr.msk.bf16.vlgmr.msra.gmra.mrb[28].mxu0 %vm1739_vm3, %v1856_v26  ;;  %3065 = vmatmul.mubr.msk.bf16.vlgmr.msra.gmra.mrb[28].mxu1 %vm1739_vm3, %v1857_v30 }
 0x521   :  { %v1843_v31 = vmul.f32 %v3218_v9, %v2852_v61  ;;  %3069 = vmatpush3.bf16.msra.mxu0 %v2141_v28  ;;  %3075 = vmatpush3.bf16.msra.mxu1 %v2187_v56 }
 0x522   :  { %3070 = vmatprep.mubr.msk.bf16.mxu0 %vm3303_vm1, %v3301_v2  ;;  %3076 = vmatprep.mubr.msk.bf16.mxu1 %vm3303_vm1, %v3301_v2 }
 0x523   :  { %v1851_v7 = vmul.f32 %v1843_v31, %v3665_v13  ;;  %3080 = vmatprep.subr.bf16.mxu0 %v3301_v2  ;;  %3100 = vmatprep.subr.bf16.mxu1 %v3301_v2 }
 0x525   :  { %v1859_v44 = vpack.c.bf16 %v1851_v7, %v1851_v7 }
 0x528   :  { %3071 = vmatmul.mubr.msk.bf16.vlgmr.msra.gmra.mrb[32].mxu0 %vm1739_vm3, %v1858_v33  ;;  %3077 = vmatmul.mubr.msk.bf16.vlgmr.msra.gmra.mrb[32].mxu1 %vm1739_vm3, %v1859_v44 }
 0x529   :  { %3096 = vmatprep.mubr.msk.bf16.mxu0 %vm3303_vm1, %v3301_v2  ;;  %3116 = vmatprep.mubr.msk.bf16.mxu1 %vm3303_vm1, %v3301_v2 }
 0x5b4   :  { %v1947_v11 = vpop.f32.mrb[20].mxu1 }
 0x5b5   :  { %v1901_v34 = vpop.f32.mrb[20].mxu0  ;;  %v3042_v35 = vpop.f32.mrb[21].mxu1 }
 0x5b6   :  { %v3036_v13 = vpop.f32.mrb[21].mxu0  ;;  %v1950_v36 = vpop.f32.mrb[22].mxu1 }
 0x5b7   :  { %v1904_v37 = vpop.f32.mrb[22].mxu0  ;;  %v3043_v38 = vpop.f32.mrb[23].mxu1 }
 0x5b8   :  { %v3037_v23 = vpop.f32.mrb[23].mxu0 }
 0x5bd   :  { %v1993_v43 = vpop.f32.mrb[24].mxu0 }
 0x5be   :  { %v2229_v39 = vcombine.low %v1901_v34, %v1993_v43  ;;  %v2230_v40 = vcombine.high %v1901_v34, %v1993_v43  ;;  %v3048_v41 = vpop.f32.mrb[25].mxu0 }
 0x5bf   :  { %v1996_v19 = vpop.f32.mrb[26].mxu0 }
 0x5c0   :  { %v3049_v42 = vpop.f32.mrb[27].mxu0  ;;  %v2039_v45 = vpop.f32.mrb[24].mxu1  ;;  %v2237_v50 = vrot.slane %v2229_v39, %v3425_v18  ;;  %v2244_v51 = vrot.slane %v2230_v40, %v3425_v18 }
 0x5c1   :  { %v2245_v46 = vcombine.low %v1947_v11, %v2039_v45  ;;  %v2246_v47 = vcombine.high %v1947_v11, %v2039_v45  ;;  %v3054_v48 = vpop.f32.mrb[25].mxu1 }
 0x5c2   :  { %v2042_v49 = vpop.f32.mrb[26].mxu1 }
 0x5c3   :  { %v2253_v53 = vrot.slane %v2245_v46, %v3425_v18  ;;  %v2260_v55 = vrot.slane %v2246_v47, %v3425_v18  ;;  %v3055_v58 = vpop.f32.mrb[27].mxu1 }
 0x5c5   :  { %v2261_v29 = vcombine.low %v2237_v50, %v2253_v53  ;;  %v2262_v54 = vcombine.high %v2237_v50, %v2253_v53  ;;  %v2277_v59 = vcombine.low %v2244_v51, %v2260_v55  ;;  %v2278_v52 = vcombine.high %v2244_v51, %v2260_v55 }
 0x5c7   :  { %v2269_v62 = vrot.slane %v2261_v29, %v3430_v32  ;;  %v2276_v60 = vrot.slane %v2262_v54, %v3430_v32  ;;  %v2285_v63 = vrot.slane %v2277_v59, %v3430_v32  ;;  %v2292_v0 = vrot.slane %v2278_v52, %v3430_v32 }
 0x5c9   :  { %v2365_v1 = vcombine.low %v2269_v62, %v2276_v60  ;;  %v2881_v5 = vcombine.high %v2269_v62, %v2276_v60  ;;  %v2381_v3 = vcombine.low %v2285_v63, %v2292_v0  ;;  %v2882_v4 = vcombine.high %v2285_v63, %v2292_v0 }
 0x5cb   :  { %v2372_v6 = vrot.slane %v2365_v1, %v3425_v18  ;;  %v2380_v57 = vrot.slane %v2881_v5, %v3425_v18  ;;  %v2388_v12 = vrot.slane %v2381_v3, %v3425_v18  ;;  %v2396_v61 = vrot.slane %v2882_v4, %v3425_v18 }
 0x5cd   :  { %v2397_v15 = vcombine.low %v2372_v6, %v2380_v57  ;;  %v2413_v14 = vcombine.low %v2388_v12, %v2396_v61  ;;  %v2398_v16 = vcombine.high %v2372_v6, %v2380_v57  ;;  %v2414_v17 = vcombine.high %v2388_v12, %v2396_v61 }
 0x5cf   :  { %v3761_v20 = vrot.slane %v2397_v15, %v3430_v32  ;;  %v3764_v21 = vrot.slane %v2413_v14, %v3430_v32  ;;  %v2412_v22 = vrot.slane %v2398_v16, %v3430_v32  ;;  %v2428_v24 = vrot.slane %v2414_v17, %v3430_v32 }
 0x5d1   :  { %v2430_v26 = vcombine.high %v3761_v20, %v3764_v21  ;;  %v2431_v30 = vcombine.low %v2412_v22, %v2428_v24  ;;  %v2432_v9 = vcombine.high %v2412_v22, %v2428_v24  ;;  %v2429_v28 = vcombine.low %v3761_v20, %v3764_v21 }
 0x5d3   :  { %2503 = vrot.lane.b32.xlu0 %v2430_v26, %s3306_s19 }
 0x5d7   :  { %2511 = vrot.lane.b32.xlu0 %v2431_v30, %s3304_s17 }
 0x5db   :  { %2519 = vrot.lane.b32.xlu0 %v2432_v9, %s3305_s18 }
 0x5f3   :  { %v2085_v56 = vpop.f32.mrb[28].mxu0  ;;  %v2131_v31 = vpop.f32.mrb[28].mxu1 }
 0x5f4   :  { %v3060_v25 = vpop.f32.mrb[29].mxu0  ;;  %v3066_v7 = vpop.f32.mrb[29].mxu1 }
 0x5f5   :  { %v2088_v44 = vpop.f32.mrb[30].mxu0  ;;  %v2134_v33 = vpop.f32.mrb[30].mxu1 }
 0x5f6   :  { %v3061_v11 = vpop.f32.mrb[31].mxu0  ;;  %v3067_v34 = vpop.f32.mrb[31].mxu1 }
 0x5fb   :  { %v2177_v35 = vpop.f32.mrb[32].mxu0  ;;  %v2223_v13 = vpop.f32.mrb[32].mxu1 }
 0x5fc   :  { %v2297_v36 = vcombine.low %v2085_v56, %v2177_v35  ;;  %v2298_v37 = vcombine.high %v2085_v56, %v2177_v35  ;;  %v2313_v38 = vcombine.low %v2131_v31, %v2223_v13  ;;  %v2314_v23 = vcombine.high %v2131_v31, %v2223_v13  ;;  %v3072_v43 = vpop.f32.mrb[33].mxu0  ;;  %v3078_v39 = vpop.f32.mrb[33].mxu1 }
 0x5fd   :  { %v2180_v40 = vpop.f32.mrb[34].mxu0  ;;  %v2226_v41 = vpop.f32.mrb[34].mxu1 }
 0x5fe   :  { %v2305_v19 = vrot.slane %v2297_v36, %v3425_v18  ;;  %v2312_v42 = vrot.slane %v2298_v37, %v3425_v18  ;;  %v2321_v45 = vrot.slane %v2313_v38, %v3425_v18  ;;  %v2328_v46 = vrot.slane %v2314_v23, %v3425_v18  ;;  %v3073_v47 = vpop.f32.mrb[35].mxu0  ;;  %v3079_v48 = vpop.f32.mrb[35].mxu1  ;;  %v3167_v37 = vld [vmem:[#allocation5 + $0xc] ss:$20 sps:$4 sm:$0xff]   ;;  %v3169_v40 = vld [vmem:[#allocation5 + $0x5c] ss:$20 sps:$4 sm:$0xff]  }
 0x5ff   :  { %3081 = vmatpush3.bf16.msra.mxu0 %v3167_v37  ;;  %v3170_v41 = vld [vmem:[#allocation5 + $0x84] ss:$20 sps:$4 sm:$0xff]   ;;  %v3177_v48 = vld [vmem:[#allocation5 + $0x60] ss:$20 sps:$4 sm:$0xff]  }
 0x600   :  { %v2329_v49 = vcombine.low %v2305_v19, %v2321_v45  ;;  %v2330_v50 = vcombine.high %v2305_v19, %v2321_v45  ;;  %v2345_v51 = vcombine.low %v2312_v42, %v2328_v46  ;;  %v2346_v53 = vcombine.high %v2312_v42, %v2328_v46  ;;  %3082 = vmatprep.subr.bf16.mxu0 %v3301_v2  ;;  %v3171_v19 = vld [vmem:[#allocation5 + $0xac] ss:$20 sps:$4 sm:$0xff]   ;;  %v3172_v42 = vld [vmem:[#allocation5 + $0xd4] ss:$20 sps:$4 sm:$0xff]   ;;  %v3173_v45 = vld [vmem:[#allocation5 + $0xfc] ss:$20 sps:$4 sm:$0xff]  }
 0x601   :  { %v3175_v46 = vld [vmem:[#allocation5 + $0x10] ss:$20 sps:$4 sm:$0xff]   ;;  %v3176_v47 = vld [vmem:[#allocation5 + $0x38] ss:$20 sps:$4 sm:$0xff]  }
 0x602   :  { %v2337_v55 = vrot.slane %v2329_v49, %v3430_v32  ;;  %v2344_v58 = vrot.slane %v2330_v50, %v3430_v32  ;;  %v2353_v29 = vrot.slane %v2345_v51, %v3430_v32  ;;  %v2360_v54 = vrot.slane %v2346_v53, %v3430_v32  ;;  %3101 = vmatpush3.bf16.msra.mxu1 %v3175_v46  ;;  %v3178_v49 = vld [vmem:[#allocation5 + $0x88] ss:$20 sps:$4 sm:$0xff]   ;;  %v3179_v50 = vld [vmem:[#allocation5 + $0xb0] ss:$20 sps:$4 sm:$0xff]   ;;  %v3180_v51 = vld [vmem:[#allocation5 + $0xd8] ss:$20 sps:$4 sm:$0xff]  }
 0x603   :  { %3102 = vmatprep.subr.bf16.mxu1 %v3301_v2 }
 0x604   :  { %v2433_v59 = vcombine.low %v2337_v55, %v2344_v58  ;;  %v2883_v52 = vcombine.high %v2337_v55, %v2344_v58  ;;  %v2449_v62 = vcombine.low %v2353_v29, %v2360_v54  ;;  %v2884_v60 = vcombine.high %v2353_v29, %v2360_v54 }
 0x606   :  { %v2440_v63 = vrot.slane %v2433_v59, %v3425_v18  ;;  %v2448_v0 = vrot.slane %v2883_v52, %v3425_v18  ;;  %v2456_v1 = vrot.slane %v2449_v62, %v3425_v18  ;;  %v2464_v5 = vrot.slane %v2884_v60, %v3425_v18  ;;  %3103 = vmatpush3.bf16.msra.mxu1 %v3176_v47  ;;  %v2885_v60 = vld [vmem:[%s3847_s3 + $0x2] ss:$0 sm:$0xff] }
 0x607   :  { %3104 = vmatprep.subr.bf16.mxu1 %v3301_v2 }
 0x608   :  { %v2465_v3 = vcombine.low %v2440_v63, %v2448_v0  ;;  %v2481_v4 = vcombine.low %v2456_v1, %v2464_v5  ;;  %v2466_v6 = vcombine.high %v2440_v63, %v2448_v0  ;;  %v2482_v57 = vcombine.high %v2456_v1, %v2464_v5  ;;  %v2886_v5 = vld [vmem:[%s3847_s3 + $0x3] ss:$0 sm:$0xff] }
 0x60a   :  { %v2473_v12 = vrot.slane %v2465_v3, %v3430_v32  ;;  %v2489_v61 = vrot.slane %v2481_v4, %v3430_v32  ;;  %v2480_v15 = vrot.slane %v2466_v6, %v3430_v32  ;;  %v2496_v14 = vrot.slane %v2482_v57, %v3430_v32  ;;  %3105 = vmatpush3.bf16.msra.mxu1 %v3177_v48 }
 0x60b   :  { %3106 = vmatprep.subr.bf16.mxu1 %v3301_v2 }
 0x60c   :  { %v2498_v16 = vcombine.high %v2473_v12, %v2489_v61  ;;  %v2499_v17 = vcombine.low %v2480_v15, %v2496_v14  ;;  %v2500_v22 = vcombine.high %v2480_v15, %v2496_v14  ;;  %v2497_v24 = vcombine.low %v2473_v12, %v2489_v61  ;;  %v3181_v12 = vld [vmem:[#allocation5 + $0x100] ss:$20 sps:$4 sm:$0xff]   ;;  %v3182_v61 = vld [vmem:[#allocation5 + $0x128] ss:$20 sps:$4 sm:$0xff]   ;;  %v2887_v15 = vld [vmem:[%s3846_s2 + $0x3] ss:$0 sm:$0xff] }
 0x60e   :  { %2505 = vrot.lane.b32.xlu0 %v2498_v16, %s3306_s19  ;;  %3107 = vmatpush3.bf16.msra.mxu1 %v3178_v49 }
 0x60f   :  { %3108 = vmatprep.subr.bf16.mxu1 %v3301_v2 }
 0x612   :  { %2513 = vrot.lane.b32.xlu0 %v2499_v17, %s3304_s17  ;;  %3109 = vmatpush3.bf16.msra.mxu1 %v3179_v50 }
 0x613   :  { %3110 = vmatprep.subr.bf16.mxu1 %v3301_v2 }
 0x616   :  { %2521 = vrot.lane.b32.xlu0 %v2500_v22, %s3305_s18  ;;  %3111 = vmatpush3.bf16.msra.mxu1 %v3180_v51 }
 0x617   :  { %3112 = vmatprep.subr.bf16.mxu1 %v3301_v2 }
 0x61a   :  { %3113 = vmatpush3.bf16.msra.mxu1 %v3181_v12 }
 0x61b   :  { %3114 = vmatprep.subr.bf16.mxu1 %v3301_v2 }
 0x61e   :  { %3115 = vmatpush3.bf16.msra.mxu1 %v3182_v61 }
 0x645   :  { %v2504_v18 = vpop.permute.xlu0 %2503 }
 0x646   :  { %v2525_v30 = vsel %vm1370_vm2, %v2429_v28, %v2504_v18 }
 0x649   :  { %v2512_v26 = vpop.permute.xlu0 %2511 }
 0x64a   :  { %v2528_v32 = vsel %vm2527_vm14, %v2525_v30, %v2512_v26 }
 0x64d   :  { %v2520_v9 = vpop.permute.xlu0 %2519 }
 0x64e   :  { %v2531_v56 = vsel %vm2530_vm15, %v2528_v32, %v2520_v9  ;;  %v2896_v9 = vld [vmem:[%s3846_s2 + $0x4] ss:$0 sm:$0xff] }
 0x64f   :  { %v2533_v31 = vadd.f32 %v2531_v56, %v3416_v8  ;;  %v3168_v8 = vld [vmem:[#allocation5 + $0x34] ss:$20 sps:$4 sm:$0xff]  }
 0x650   :  { %3083 = vmatpush3.bf16.msra.mxu0 %v3168_v8 }
 0x651   :  { %2535 = vadd.xlane.f32.xlu0 %v2533_v31  ;;  %3084 = vmatprep.subr.bf16.mxu0 %v3301_v2 }
 0x654   :  { %3085 = vmatpush3.bf16.msra.mxu0 %v3169_v40 }
 0x655   :  { %3086 = vmatprep.subr.bf16.mxu0 %v3301_v2 }
 0x658   :  { %3087 = vmatpush3.bf16.msra.mxu0 %v3170_v41 }
 0x659   :  { %3088 = vmatprep.subr.bf16.mxu0 %v3301_v2 }
 0x65c   :  { %3089 = vmatpush3.bf16.msra.mxu0 %v3171_v19 }
 0x65d   :  { %3090 = vmatprep.subr.bf16.mxu0 %v3301_v2 }
 0x660   :  { %3091 = vmatpush3.bf16.msra.mxu0 %v3172_v42 }
 0x661   :  { %3092 = vmatprep.subr.bf16.mxu0 %v3301_v2 }
 0x664   :  { %3093 = vmatpush3.bf16.msra.mxu0 %v3173_v45 }
 0x665   :  { %3094 = vmatprep.subr.bf16.mxu0 %v3301_v2 }
 0x680   :  { %v2506_v25 = vpop.permute.xlu0 %2505 }
 0x681   :  { %v2526_v44 = vsel %vm1370_vm2, %v2497_v24, %v2506_v25 }
 0x684   :  { %v2514_v7 = vpop.permute.xlu0 %2513 }
 0x685   :  { %v2529_v33 = vsel %vm2527_vm14, %v2526_v44, %v2514_v7 }
 0x688   :  { %v2522_v11 = vpop.permute.xlu0 %2521 }
 0x689   :  { %v2532_v34 = vsel %vm2530_vm15, %v2529_v33, %v2522_v11 }
 0x68a   :  { %v2534_v35 = vadd.f32 %v2532_v34, %v3418_v10 }
 0x68c   :  { %2537 = vadd.xlane.f32.xlu1 %v2534_v35 }
 0x6de   :  { %v2536_v13 = vpop.xlane.xlu0 %2535 }
 0x6df   :  { %v2539_v20 = vmul.f32 0.03125, %v2536_v13 }
 0x6e1   :  { %v2541_v21 = vsub.f32 %v2533_v31, %v2539_v20 }
 0x6e3   :  { %v2543_v28 = vmul.f32 %v3373_v27, %v2541_v21 }
 0x6e5   :  { %v2545_v36 = vmul.f32 %v2543_v28, %v2543_v28 }
 0x6e7   :  { %2547 = vadd.xlane.f32.xlu1 %v2545_v36 }
 0x719   :  { %v2538_v38 = vpop.xlane.xlu1 %2537 }
 0x71a   :  { %v2540_v23 = vmul.f32 0.03125, %v2538_v38 }
 0x71c   :  { %v2542_v43 = vsub.f32 %v2534_v35, %v2540_v23 }
 0x71e   :  { %v2544_v10 = vmul.f32 %v3373_v27, %v2542_v43  ;;  %v3174_v27 = vld [vmem:[#allocation5 + $0x124] ss:$20 sps:$4 sm:$0xff]  }
 0x71f   :  { %3095 = vmatpush3.bf16.msra.mxu0 %v3174_v27 }
 0x720   :  { %v2546_v39 = vmul.f32 %v2544_v10, %v2544_v10 }
 0x722   :  { %2549 = vadd.xlane.f32.xlu1 %v2546_v39 }
 0x774   :  { %v2548_v53 = vpop.xlane.xlu1 %2547 }
 0x775   :  { %v2551_v55 = vmul.f32 0.032258064, %v2548_v53 }
 0x777   :  { %v2553_v58 = vadd.f32 1e-08, %v2551_v55 }
 0x779   :  { %3219 = vrsqrt.f32 %v2553_v58 }
 0x783   :  { %v3220_v52 = vpop.eup %3219 }
 0x784   :  { %v2557_v62 = vmul.f32 %v3220_v52, %v2543_v28 }
 0x786   :  { %v2563_v1 = vmul.f32 %v2885_v60, %v2557_v62 }
 0x788   :  { %v2569_v4 = vadd.f32 %v2886_v5, %v2563_v1 }
 0x7af   :  { %v2550_v29 = vpop.xlane.xlu1 %2549 }
 0x7b0   :  { %v2552_v54 = vmul.f32 0.032258064, %v2550_v29 }
 0x7b2   :  { %v2554_v59 = vadd.f32 1e-08, %v2552_v54 }
 0x7b4   :  { %3221 = vrsqrt.f32 %v2554_v59 }
 0x7be   :  { %v3222_v63 = vpop.eup %3221 }
 0x7bf   :  { %v2558_v0 = vmul.f32 %v3222_v63, %v2544_v10 }
 0x7c1   :  { %v2564_v3 = vmul.f32 %v2885_v60, %v2558_v0 }
 0x7c3   :  { %v2570_v6 = vadd.f32 %v2886_v5, %v2564_v3 }
 0x7c5   :  { %v2571_v57 = vpack.c.bf16 %v2570_v6, %v2569_v4 }
 0x7c7   :  { %3097 = vmatmul.mubr.bf16.vlgmr.msra.gmra.mrb[36].mxu0 %v2571_v57 }
 0x89a   :  { %v2677_v14 = vpop.f32.mrb[36].mxu0 }
 0x89b   :  { %v2678_v16 = vadd.f32 %v2887_v15, %v2677_v14  ;;  %v3098_v17 = vpop.f32.mrb[37].mxu0 }
 0x89c   :  { %v2680_v22 = vpop.f32.mrb[38].mxu0 }
 0x89d   :  { %v2681_v24 = vadd.f32 %v2887_v15, %v2680_v22  ;;  %v3099_v18 = vpop.f32.mrb[39].mxu0  ;;  %v2684_v26 = vmax.f32 %v2678_v16, 0.0 }
 0x89f   :  { %v2685_v30 = vmax.f32 %v2681_v24, 0.0 }
 0x8a1   :  { %v2686_v32 = vpack.c.bf16 %v2685_v30, %v2684_v26 }
 0x8a3   :  { %3117 = vmatmul.mubr.bf16.vlgmr.msra.gmra.mrb[36].mxu1 %v2686_v32 }
 0x976   :  { %v2792_v2 = vpop.f32.mrb[36].mxu1 }
 0x977   :  { %v2793_v56 = vadd.f32 %v2896_v9, %v2792_v2  ;;  %v3118_v31 = vpop.f32.mrb[37].mxu1 }
 0x978   :  { %v2795_v25 = vpop.f32.mrb[38].mxu1 }
 0x979   :  { %v2799_v7 = vadd.f32 %v2793_v56, %v2569_v4  ;;  %v2796_v44 = vadd.f32 %v2896_v9, %v2795_v25  ;;  %v3119_v33 = vpop.f32.mrb[39].mxu1 }
 0x97b   :  { %2801 = vst [vmem:[#allocation7] sm:$0xff] %v2799_v7  ;;  %v2800_v11 = vadd.f32 %v2796_v44, %v2570_v6 }
 0x97d   :  { %2802 = vst [vmem:[#allocation7 + $0x8] sm:$0xff] %v2800_v11 }
 0x97e   :  { %3278 = shalt.err (!%p3275_p6)
}
 0x97f   :  { %s3279_s0 = scalar_lea.hbm %s3848_s4, 256 }
 0x980   :  { %p3280_p7 = scmp.ne.s32.totalorder %s3848_s4, %s3279_s0  ;;  %p3283_p8 = scmp.lt.u32.totalorder %s3279_s0, %s3848_s4 }
 0x982   :  { %p3285_p9 = pnand %p3283_p8, %p3280_p7 }
 0x984   :  { %3288 = shalt.err (!%p3285_p9)
}
 0x985   :  { %2814 = dma.vmem_to_hbm [thread:$0]  %s2809_s10, 256, %s3848_s4, [#allocation4], %s3296_s25, %s3296_s25, %s3297_s26  }
 0x986   :  { %3293 = dma.done.wait [#allocation4], 256  }
 0x987   :  { %3294 = vsyncadd [#allocation4], 4294967040 }
 0x988   :  { %2818 = vsyncpa [#allocation3], 1 }
 0x989   :  { %2819 = vsyncpa [#allocation6], 1 }
 0x98a   :  { %2820 = vsyncpa [#allocation4], 1 }

</bundles_post_ra>
